<compile_context>
chip_gen: v7x
topology: tpu7x:2x2x1
jax: 0.10.0
libtpu: 0.0.40
codegen_flags: <defaults>
</compile_context>

<pallas_src>
import functools
import math

import jax
import jax.numpy as jnp
from jax.experimental import pallas as pl


CFG = dict(
    vocab_size=100,
    hidden_size=32,
    num_layers=2,
    num_heads=2,
    intermediate_size=64,
    max_position=16,
    type_vocab_size=2,
    num_labels=2,
)


# ---------------------------------------------------------------------------
# The single fused kernel
# ---------------------------------------------------------------------------

def _bert_fused_kernel(emb_ref, bias_ref,
                       embg_ref, embb_ref,
                       wq_ref, bq_ref, wk_ref, bk_ref, wv_ref, bv_ref,
                       wo_ref, bo_ref, ln1g_ref, ln1b_ref,
                       w1_ref, b1_ref, w2_ref, b2_ref, ln2g_ref, ln2b_ref,
                       wp_ref, bp_ref, wc_ref, bc_ref,
                       out_ref,
                       *, num_layers, num_heads, batch, seq, eps, scale):
    """emb-LN -> num_layers x (attention + FFN) -> pooler -> classifier."""
    cdt = jnp.bfloat16            # MXU operand dtype (f32 accumulation)

    def layer_norm(y, g, b):      # y: (M, H) f32, g/b: (1, H) f32
        mean = jnp.mean(y, axis=-1, keepdims=True)
        var = jnp.mean((y - mean) ** 2, axis=-1, keepdims=True)
        return (y - mean) * jax.lax.rsqrt(var + eps) * g + b

    # ----- embedding LayerNorm -----
    x32 = layer_norm(emb_ref[...].astype(jnp.float32),
                     embg_ref[...], embb_ref[...])        # (M, H) f32
    x = x32.astype(cdt)                                   # (M, H) bf16

    for l in range(num_layers):
        # ----- self-attention -----
        # Per-head projections via head-split weights on a leading axis:
        # no lane-offset slices of a packed (M, 3H) buffer.
        q_h, k_h, v_h = [], [], []
        for h in range(num_heads):
            q_h.append((jnp.dot(x, wq_ref[l, h],
                                preferred_element_type=jnp.float32)
                        + bq_ref[l, h]).astype(cdt))
            k_h.append((jnp.dot(x, wk_ref[l, h],
                                preferred_element_type=jnp.float32)
                        + bk_ref[l, h]).astype(cdt))
            v_h.append((jnp.dot(x, wv_ref[l, h],
                                preferred_element_type=jnp.float32)
                        + bv_ref[l, h]).astype(cdt))

        # Heads are merged through the output projection (sum of per-head
        # ctx_h @ Wo_h), so no lane-axis concat of head contexts is needed.
        attn_rows = []
        for b in range(batch):
            r0 = b * seq                                  # sublane-aligned
            bias_b = bias_ref[b]                          # (1, S) f32
            acc = None
            for h in range(num_heads):
                qb = q_h[h][r0:r0 + seq]
                kb = k_h[h][r0:r0 + seq]
                vb = v_h[h][r0:r0 + seq]
                # q @ k^T without materializing a transpose (NT matmul).
                s = jax.lax.dot_general(qb, kb, (((1,), (1,)), ((), ())),
                                        preferred_element_type=jnp.float32)
                s = s * scale + bias_b
                s = s - jnp.max(s, axis=-1, keepdims=True)
                p = jnp.exp(s)
                p = p * pl.reciprocal(jnp.sum(p, axis=-1, keepdims=True),
                                      approx=True)
                ctx = jnp.dot(p.astype(cdt), vb,
                              preferred_element_type=jnp.float32)   # (S, Dh)
                proj = jnp.dot(ctx.astype(cdt), wo_ref[l, h],
                               preferred_element_type=jnp.float32)  # (S, H)
                acc = proj if acc is None else acc + proj
            attn_rows.append(acc)
        attn = jnp.concatenate(attn_rows, axis=0)         # (M, H) f32, sublane

        # output-projection bias + residual + LayerNorm (f32 residual carry)
        y = layer_norm(attn + bo_ref[l] + x32, ln1g_ref[l], ln1b_ref[l])
        yb = y.astype(cdt)

        # ----- FFN: intermediate never leaves VMEM/vregs -----
        t = jnp.dot(yb, w1_ref[l], preferred_element_type=jnp.float32) \
            + b1_ref[l]
        # TODO(synk): HF BERT default is exact (erf) GELU; tanh approx used.
        t = jax.nn.gelu(t, approximate=True)
        f = jnp.dot(t.astype(cdt), w2_ref[l],
                    preferred_element_type=jnp.float32)
        y2 = layer_norm(f + b2_ref[l] + y, ln2g_ref[l], ln2b_ref[l])

        x32 = y2
        x = y2.astype(cdt)

    # ----- pooler (tanh on [CLS]) + classifier head -----
    cls = jnp.concatenate([x32[b * seq:b * seq + 1] for b in range(batch)],
                          axis=0)                                   # (B, H) f32
    pooled = jnp.tanh(jnp.dot(cls.astype(cdt), wp_ref[...],
                              preferred_element_type=jnp.float32)
                      + bp_ref[...])
    logits = jnp.dot(pooled.astype(cdt), wc_ref[...],
                     preferred_element_type=jnp.float32) + bc_ref[...]
    out_ref[...] = logits


# ---------------------------------------------------------------------------
# Parameter init (PyTorch-shaped) and packing into the kernel layout
# ---------------------------------------------------------------------------

def init_params(key, cfg):
    H = cfg["hidden_size"]
    I = cfg["intermediate_size"]
    wdt = jnp.bfloat16   # MXU operands in bf16; biases / LN params stay f32.

    def nrm(k, shape, scale=0.02, dtype=wdt):
        return (scale * jax.random.normal(k, shape)).astype(dtype)

    keys = iter(jax.random.split(key, 64))
    params = {
        "word_emb": nrm(next(keys), (cfg["vocab_size"], H), dtype=jnp.float32),
        "pos_emb": nrm(next(keys), (cfg["max_position"], H), dtype=jnp.float32),
        "type_emb": nrm(next(keys), (cfg["type_vocab_size"], H),
                        dtype=jnp.float32),
        "emb_ln_g": jnp.ones((H,), jnp.float32),
        "emb_ln_b": jnp.zeros((H,), jnp.float32),
        "layers": [],
        "pooler_w": nrm(next(keys), (H, H)),
        "pooler_b": jnp.zeros((H,), jnp.float32),
        "cls_w": nrm(next(keys), (H, cfg["num_labels"])),
        "cls_b": jnp.zeros((cfg["num_labels"],), jnp.float32),
    }
    for _ in range(cfg["num_layers"]):
        layer = {
            "wq": nrm(next(keys), (H, H)), "bq": jnp.zeros((H,), jnp.float32),
            "wk": nrm(next(keys), (H, H)), "bk": jnp.zeros((H,), jnp.float32),
            "wv": nrm(next(keys), (H, H)), "bv": jnp.zeros((H,), jnp.float32),
            "wo": nrm(next(keys), (H, H)), "bo": jnp.zeros((H,), jnp.float32),
            "ln1_g": jnp.ones((H,), jnp.float32),
            "ln1_b": jnp.zeros((H,), jnp.float32),
            "w1": nrm(next(keys), (H, I)), "b1": jnp.zeros((I,), jnp.float32),
            "w2": nrm(next(keys), (I, H)), "b2": jnp.zeros((H,), jnp.float32),
            "ln2_g": jnp.ones((H,), jnp.float32),
            "ln2_b": jnp.zeros((H,), jnp.float32),
        }
        params["layers"].append(layer)
    return params


def pack_params(params, cfg):
    """Stack per-layer weights and split Q/K/V/O head-major on a leading axis
    so the kernel never does lane-offset slices."""
    H = cfg["hidden_size"]
    I = cfg["intermediate_size"]
    nH = cfg["num_heads"]
    Dh = H // nH
    L = cfg["num_layers"]

    def stack(name):
        return jnp.stack([lp[name] for lp in params["layers"]], axis=0)

    def split_out_heads(w):     # (L, H, H) -> (L, nH, H, Dh): W[:, h*Dh:(h+1)*Dh]
        return w.reshape(L, H, nH, Dh).transpose(0, 2, 1, 3)

    return dict(
        word_emb=params["word_emb"],
        pos_emb=params["pos_emb"],
        type_emb=params["type_emb"],
        emb_ln_g=params["emb_ln_g"].reshape(1, H),
        emb_ln_b=params["emb_ln_b"].reshape(1, H),
        wq=split_out_heads(stack("wq")), bq=stack("bq").reshape(L, nH, 1, Dh),
        wk=split_out_heads(stack("wk")), bk=stack("bk").reshape(L, nH, 1, Dh),
        wv=split_out_heads(stack("wv")), bv=stack("bv").reshape(L, nH, 1, Dh),
        wo=stack("wo").reshape(L, nH, Dh, H),      # Wo rows h*Dh:(h+1)*Dh
        bo=stack("bo").reshape(L, 1, H),
        ln1_g=stack("ln1_g").reshape(L, 1, H),
        ln1_b=stack("ln1_b").reshape(L, 1, H),
        w1=stack("w1"), b1=stack("b1").reshape(L, 1, I),
        w2=stack("w2"), b2=stack("b2").reshape(L, 1, H),
        ln2_g=stack("ln2_g").reshape(L, 1, H),
        ln2_b=stack("ln2_b").reshape(L, 1, H),
        pooler_w=params["pooler_w"],
        pooler_b=params["pooler_b"].reshape(1, H),
        cls_w=params["cls_w"],
        cls_b=params["cls_b"].reshape(1, cfg["num_labels"]),
    )


# ---------------------------------------------------------------------------
# Forward pass glue (embeddings gather in XLA, everything else in the kernel)
# ---------------------------------------------------------------------------

def bert_classifier_forward(packed, input_ids, attention_mask, cfg):
    B, S = input_ids.shape
    H = cfg["hidden_size"]
    nH = cfg["num_heads"]
    Dh = H // nH
    L = cfg["num_layers"]
    nLab = cfg["num_labels"]

    # --- embeddings: data-dependent gather stays in XLA ---
    word = jnp.take(packed["word_emb"], input_ids, axis=0)          # (B, S, H)
    pos = packed["pos_emb"][:S][None, :, :]                         # (1, S, H)
    typ = packed["type_emb"][0][None, None, :]                      # token_type_ids = 0
    emb = (word + pos + typ).reshape(B * S, H).astype(jnp.float32)

    # additive attention bias, kept at (B, 1, S): no per-head duplication
    attn_bias = ((1.0 - attention_mask.astype(jnp.float32)) * -1e9)
    attn_bias = attn_bias.reshape(B, 1, S)

    kernel = functools.partial(
        _bert_fused_kernel,
        num_layers=L, num_heads=nH, batch=B, seq=S,
        eps=1e-12, scale=1.0 / math.sqrt(Dh))

    # Single fused kernel call: no grid, whole (tiny) arrays resident in VMEM.
    logits = pl.pallas_call(
        kernel,
        out_shape=jax.ShapeDtypeStruct((B, nLab), jnp.float32),
    )(emb, attn_bias,
      packed["emb_ln_g"], packed["emb_ln_b"],
      packed["wq"], packed["bq"], packed["wk"], packed["bk"],
      packed["wv"], packed["bv"],
      packed["wo"], packed["bo"], packed["ln1_g"], packed["ln1_b"],
      packed["w1"], packed["b1"], packed["w2"], packed["b2"],
      packed["ln2_g"], packed["ln2_b"],
      packed["pooler_w"], packed["pooler_b"],
      packed["cls_w"], packed["cls_b"])
    return logits


# ---------------------------------------------------------------------------
# main
# ---------------------------------------------------------------------------

if __name__ == "__main__":
    key = jax.random.PRNGKey(0)
    pkey, dkey = jax.random.split(key)

    params = init_params(pkey, CFG)
    packed = pack_params(params, CFG)

    B, S = 2, 8
    input_ids = jax.random.randint(dkey, (B, S), 0, CFG["vocab_size"],
                                   dtype=jnp.int32)
    # second example has 3 padding tokens masked out
    attention_mask = jnp.array(
        [[1, 1, 1, 1, 1, 1, 1, 1],
         [1, 1, 1, 1, 1, 0, 0, 0]], dtype=jnp.int32)

    fwd = jax.jit(functools.partial(bert_classifier_forward, cfg=CFG))
    logits = fwd(packed, input_ids, attention_mask)
    logits = jax.block_until_ready(logits)

    assert logits.shape == (B, CFG["num_labels"])
    assert bool(jnp.all(jnp.isfinite(logits)))
    print("KERNEL_OK")
</pallas_src>

<mosaic_0001>
module attributes {stable_mosaic.version = 11 : i64} {
  func.func @_bert_fused_kernel(%arg0: memref<16x32xf32, #tpu.memory_space<vmem>>, %arg1: memref<2x1x8xf32, #tpu.memory_space<vmem>>, %arg2: memref<1x32xf32, #tpu.memory_space<vmem>>, %arg3: memref<1x32xf32, #tpu.memory_space<vmem>>, %arg4: memref<2x2x32x16xbf16, #tpu.memory_space<vmem>>, %arg5: memref<2x2x1x16xf32, #tpu.memory_space<vmem>>, %arg6: memref<2x2x32x16xbf16, #tpu.memory_space<vmem>>, %arg7: memref<2x2x1x16xf32, #tpu.memory_space<vmem>>, %arg8: memref<2x2x32x16xbf16, #tpu.memory_space<vmem>>, %arg9: memref<2x2x1x16xf32, #tpu.memory_space<vmem>>, %arg10: memref<2x2x16x32xbf16, #tpu.memory_space<vmem>>, %arg11: memref<2x1x32xf32, #tpu.memory_space<vmem>>, %arg12: memref<2x1x32xf32, #tpu.memory_space<vmem>>, %arg13: memref<2x1x32xf32, #tpu.memory_space<vmem>>, %arg14: memref<2x32x64xbf16, #tpu.memory_space<vmem>>, %arg15: memref<2x1x64xf32, #tpu.memory_space<vmem>>, %arg16: memref<2x64x32xbf16, #tpu.memory_space<vmem>>, %arg17: memref<2x1x32xf32, #tpu.memory_space<vmem>>, %arg18: memref<2x1x32xf32, #tpu.memory_space<vmem>>, %arg19: memref<2x1x32xf32, #tpu.memory_space<vmem>>, %arg20: memref<32x32xbf16, #tpu.memory_space<vmem>>, %arg21: memref<1x32xf32, #tpu.memory_space<vmem>>, %arg22: memref<32x2xbf16, #tpu.memory_space<vmem>>, %arg23: memref<1x2xf32, #tpu.memory_space<vmem>>, %arg24: memref<2x2xf32, #tpu.memory_space<vmem>>) attributes {dimension_semantics = [], scalar_prefetch = 0 : i64, scratch_operands = 0 : i64, tpu.core_type = #tpu.core_type<tc>} {
    %c0 = arith.constant 0 : index
    %c0_0 = arith.constant 0 : index
    %0 = vector.load %arg0[%c0, %c0_0] : memref<16x32xf32, #tpu.memory_space<vmem>>, vector<16x32xf32>
    %c0_1 = arith.constant 0 : index
    %c0_2 = arith.constant 0 : index
    %1 = vector.load %arg2[%c0_1, %c0_2] : memref<1x32xf32, #tpu.memory_space<vmem>>, vector<1x32xf32>
    %c0_3 = arith.constant 0 : index
    %c0_4 = arith.constant 0 : index
    %2 = vector.load %arg3[%c0_3, %c0_4] : memref<1x32xf32, #tpu.memory_space<vmem>>, vector<1x32xf32>
    %cst = arith.constant dense<0.000000e+00> : vector<16xf32>
    %3 = vector.multi_reduction <add>, %0, %cst [1] : vector<16x32xf32> to vector<16xf32>
    %4 = vector.shape_cast %3 : vector<16xf32> to vector<16x1xf32>
    %cst_5 = arith.constant 3.200000e+01 : f32
    %5 = vector.broadcast %cst_5 : f32 to vector<16x1xf32>
    %6 = arith.divf %4, %5 : vector<16x1xf32>
    %7 = vector.broadcast %6 : vector<16x1xf32> to vector<16x32xf32>
    %8 = arith.subf %0, %7 : vector<16x32xf32>
    %9 = arith.mulf %8, %8 : vector<16x32xf32>
    %cst_6 = arith.constant dense<0.000000e+00> : vector<16xf32>
    %10 = vector.multi_reduction <add>, %9, %cst_6 [1] : vector<16x32xf32> to vector<16xf32>
    %11 = vector.shape_cast %10 : vector<16xf32> to vector<16x1xf32>
    %cst_7 = arith.constant 3.200000e+01 : f32
    %12 = vector.broadcast %cst_7 : f32 to vector<16x1xf32>
    %13 = arith.divf %11, %12 : vector<16x1xf32>
    %14 = vector.broadcast %6 : vector<16x1xf32> to vector<16x32xf32>
    %15 = arith.subf %0, %14 : vector<16x32xf32>
    %cst_8 = arith.constant 9.99999996E-13 : f32
    %16 = vector.broadcast %cst_8 : f32 to vector<16x1xf32>
    %17 = arith.addf %13, %16 : vector<16x1xf32>
    %18 = math.rsqrt %17 : vector<16x1xf32>
    %19 = vector.broadcast %18 : vector<16x1xf32> to vector<16x32xf32>
    %20 = arith.mulf %15, %19 : vector<16x32xf32>
    %21 = vector.broadcast %1 : vector<1x32xf32> to vector<16x32xf32>
    %22 = arith.mulf %20, %21 : vector<16x32xf32>
    %23 = vector.broadcast %2 : vector<1x32xf32> to vector<16x32xf32>
    %24 = arith.addf %22, %23 : vector<16x32xf32>
    %25 = arith.truncf %24 : vector<16x32xf32> to vector<16x32xbf16>
    %c0_9 = arith.constant 0 : index
    %c0_10 = arith.constant 0 : index
    %c0_11 = arith.constant 0 : index
    %c0_12 = arith.constant 0 : index
    %26 = vector.load %arg4[%c0_9, %c0_10, %c0_11, %c0_12] : memref<2x2x32x16xbf16, #tpu.memory_space<vmem>>, vector<1x1x32x16xbf16>
    %27 = vector.shape_cast %26 : vector<1x1x32x16xbf16> to vector<32x16xbf16>
    %cst_13 = arith.constant dense<0.000000e+00> : vector<16x16xf32>
    %28 = tpu.matmul %25, %27, %cst_13 {dimension_numbers = #tpu.dot_dimension_numbers<[1], [0], [0], [1], [0, 0, 1, 1], [], []>} : vector<16x32xbf16>, vector<32x16xbf16>, vector<16x16xf32> -> vector<16x16xf32>
    %c0_14 = arith.constant 0 : index
    %c0_15 = arith.constant 0 : index
    %c0_16 = arith.constant 0 : index
    %c0_17 = arith.constant 0 : index
    %29 = vector.load %arg5[%c0_14, %c0_15, %c0_16, %c0_17] : memref<2x2x1x16xf32, #tpu.memory_space<vmem>>, vector<1x1x1x16xf32>
    %30 = vector.shape_cast %29 : vector<1x1x1x16xf32> to vector<1x16xf32>
    %31 = vector.broadcast %30 : vector<1x16xf32> to vector<16x16xf32>
    %32 = arith.addf %28, %31 : vector<16x16xf32>
    %33 = arith.truncf %32 : vector<16x16xf32> to vector<16x16xbf16>
    %c0_18 = arith.constant 0 : index
    %c0_19 = arith.constant 0 : index
    %c0_20 = arith.constant 0 : index
    %c0_21 = arith.constant 0 : index
    %34 = vector.load %arg6[%c0_18, %c0_19, %c0_20, %c0_21] : memref<2x2x32x16xbf16, #tpu.memory_space<vmem>>, vector<1x1x32x16xbf16>
    %35 = vector.shape_cast %34 : vector<1x1x32x16xbf16> to vector<32x16xbf16>
    %cst_22 = arith.constant dense<0.000000e+00> : vector<16x16xf32>
    %36 = tpu.matmul %25, %35, %cst_22 {dimension_numbers = #tpu.dot_dimension_numbers<[1], [0], [0], [1], [0, 0, 1, 1], [], []>} : vector<16x32xbf16>, vector<32x16xbf16>, vector<16x16xf32> -> vector<16x16xf32>
    %c0_23 = arith.constant 0 : index
    %c0_24 = arith.constant 0 : index
    %c0_25 = arith.constant 0 : index
    %c0_26 = arith.constant 0 : index
    %37 = vector.load %arg7[%c0_23, %c0_24, %c0_25, %c0_26] : memref<2x2x1x16xf32, #tpu.memory_space<vmem>>, vector<1x1x1x16xf32>
    %38 = vector.shape_cast %37 : vector<1x1x1x16xf32> to vector<1x16xf32>
    %39 = vector.broadcast %38 : vector<1x16xf32> to vector<16x16xf32>
    %40 = arith.addf %36, %39 : vector<16x16xf32>
    %41 = arith.truncf %40 : vector<16x16xf32> to vector<16x16xbf16>
    %c0_27 = arith.constant 0 : index
    %c0_28 = arith.constant 0 : index
    %c0_29 = arith.constant 0 : index
    %c0_30 = arith.constant 0 : index
    %42 = vector.load %arg8[%c0_27, %c0_28, %c0_29, %c0_30] : memref<2x2x32x16xbf16, #tpu.memory_space<vmem>>, vector<1x1x32x16xbf16>
    %43 = vector.shape_cast %42 : vector<1x1x32x16xbf16> to vector<32x16xbf16>
    %cst_31 = arith.constant dense<0.000000e+00> : vector<16x16xf32>
    %44 = tpu.matmul %25, %43, %cst_31 {dimension_numbers = #tpu.dot_dimension_numbers<[1], [0], [0], [1], [0, 0, 1, 1], [], []>} : vector<16x32xbf16>, vector<32x16xbf16>, vector<16x16xf32> -> vector<16x16xf32>
    %c0_32 = arith.constant 0 : index
    %c0_33 = arith.constant 0 : index
    %c0_34 = arith.constant 0 : index
    %c0_35 = arith.constant 0 : index
    %45 = vector.load %arg9[%c0_32, %c0_33, %c0_34, %c0_35] : memref<2x2x1x16xf32, #tpu.memory_space<vmem>>, vector<1x1x1x16xf32>
    %46 = vector.shape_cast %45 : vector<1x1x1x16xf32> to vector<1x16xf32>
    %47 = vector.broadcast %46 : vector<1x16xf32> to vector<16x16xf32>
    %48 = arith.addf %44, %47 : vector<16x16xf32>
    %49 = arith.truncf %48 : vector<16x16xf32> to vector<16x16xbf16>
    %c0_36 = arith.constant 0 : index
    %c1 = arith.constant 1 : index
    %c0_37 = arith.constant 0 : index
    %c0_38 = arith.constant 0 : index
    %50 = vector.load %arg4[%c0_36, %c1, %c0_37, %c0_38] : memref<2x2x32x16xbf16, #tpu.memory_space<vmem>>, vector<1x1x32x16xbf16>
    %51 = vector.shape_cast %50 : vector<1x1x32x16xbf16> to vector<32x16xbf16>
    %cst_39 = arith.constant dense<0.000000e+00> : vector<16x16xf32>
    %52 = tpu.matmul %25, %51, %cst_39 {dimension_numbers = #tpu.dot_dimension_numbers<[1], [0], [0], [1], [0, 0, 1, 1], [], []>} : vector<16x32xbf16>, vector<32x16xbf16>, vector<16x16xf32> -> vector<16x16xf32>
    %c0_40 = arith.constant 0 : index
    %c1_41 = arith.constant 1 : index
    %c0_42 = arith.constant 0 : index
    %c0_43 = arith.constant 0 : index
    %53 = vector.load %arg5[%c0_40, %c1_41, %c0_42, %c0_43] : memref<2x2x1x16xf32, #tpu.memory_space<vmem>>, vector<1x1x1x16xf32>
    %54 = vector.shape_cast %53 : vector<1x1x1x16xf32> to vector<1x16xf32>
    %55 = vector.broadcast %54 : vector<1x16xf32> to vector<16x16xf32>
    %56 = arith.addf %52, %55 : vector<16x16xf32>
    %57 = arith.truncf %56 : vector<16x16xf32> to vector<16x16xbf16>
    %c0_44 = arith.constant 0 : index
    %c1_45 = arith.constant 1 : index
    %c0_46 = arith.constant 0 : index
    %c0_47 = arith.constant 0 : index
    %58 = vector.load %arg6[%c0_44, %c1_45, %c0_46, %c0_47] : memref<2x2x32x16xbf16, #tpu.memory_space<vmem>>, vector<1x1x32x16xbf16>
    %59 = vector.shape_cast %58 : vector<1x1x32x16xbf16> to vector<32x16xbf16>
    %cst_48 = arith.constant dense<0.000000e+00> : vector<16x16xf32>
    %60 = tpu.matmul %25, %59, %cst_48 {dimension_numbers = #tpu.dot_dimension_numbers<[1], [0], [0], [1], [0, 0, 1, 1], [], []>} : vector<16x32xbf16>, vector<32x16xbf16>, vector<16x16xf32> -> vector<16x16xf32>
    %c0_49 = arith.constant 0 : index
    %c1_50 = arith.constant 1 : index
    %c0_51 = arith.constant 0 : index
    %c0_52 = arith.constant 0 : index
    %61 = vector.load %arg7[%c0_49, %c1_50, %c0_51, %c0_52] : memref<2x2x1x16xf32, #tpu.memory_space<vmem>>, vector<1x1x1x16xf32>
    %62 = vector.shape_cast %61 : vector<1x1x1x16xf32> to vector<1x16xf32>
    %63 = vector.broadcast %62 : vector<1x16xf32> to vector<16x16xf32>
    %64 = arith.addf %60, %63 : vector<16x16xf32>
    %65 = arith.truncf %64 : vector<16x16xf32> to vector<16x16xbf16>
    %c0_53 = arith.constant 0 : index
    %c1_54 = arith.constant 1 : index
    %c0_55 = arith.constant 0 : index
    %c0_56 = arith.constant 0 : index
    %66 = vector.load %arg8[%c0_53, %c1_54, %c0_55, %c0_56] : memref<2x2x32x16xbf16, #tpu.memory_space<vmem>>, vector<1x1x32x16xbf16>
    %67 = vector.shape_cast %66 : vector<1x1x32x16xbf16> to vector<32x16xbf16>
    %cst_57 = arith.constant dense<0.000000e+00> : vector<16x16xf32>
    %68 = tpu.matmul %25, %67, %cst_57 {dimension_numbers = #tpu.dot_dimension_numbers<[1], [0], [0], [1], [0, 0, 1, 1], [], []>} : vector<16x32xbf16>, vector<32x16xbf16>, vector<16x16xf32> -> vector<16x16xf32>
    %c0_58 = arith.constant 0 : index
    %c1_59 = arith.constant 1 : index
    %c0_60 = arith.constant 0 : index
    %c0_61 = arith.constant 0 : index
    %69 = vector.load %arg9[%c0_58, %c1_59, %c0_60, %c0_61] : memref<2x2x1x16xf32, #tpu.memory_space<vmem>>, vector<1x1x1x16xf32>
    %70 = vector.shape_cast %69 : vector<1x1x1x16xf32> to vector<1x16xf32>
    %71 = vector.broadcast %70 : vector<1x16xf32> to vector<16x16xf32>
    %72 = arith.addf %68, %71 : vector<16x16xf32>
    %73 = arith.truncf %72 : vector<16x16xf32> to vector<16x16xbf16>
    %c0_62 = arith.constant 0 : index
    %c0_63 = arith.constant 0 : index
    %c0_64 = arith.constant 0 : index
    %74 = vector.load %arg1[%c0_62, %c0_63, %c0_64] : memref<2x1x8xf32, #tpu.memory_space<vmem>>, vector<1x1x8xf32>
    %75 = vector.shape_cast %74 : vector<1x1x8xf32> to vector<1x8xf32>
    %76 = vector.extract_strided_slice %33 {offsets = [0, 0], sizes = [8, 16], strides = [1, 1]} : vector<16x16xbf16> to vector<8x16xbf16>
    %77 = vector.extract_strided_slice %41 {offsets = [0, 0], sizes = [8, 16], strides = [1, 1]} : vector<16x16xbf16> to vector<8x16xbf16>
    %78 = vector.extract_strided_slice %49 {offsets = [0, 0], sizes = [8, 16], strides = [1, 1]} : vector<16x16xbf16> to vector<8x16xbf16>
    %cst_65 = arith.constant dense<0.000000e+00> : vector<8x8xf32>
    %79 = tpu.matmul %76, %77, %cst_65 {dimension_numbers = #tpu.dot_dimension_numbers<[1], [1], [0], [0], [0, 0, 1, 0], [], []>} : vector<8x16xbf16>, vector<8x16xbf16>, vector<8x8xf32> -> vector<8x8xf32>
    %cst_66 = arith.constant 2.500000e-01 : f32
    %80 = vector.broadcast %cst_66 : f32 to vector<8x8xf32>
    %81 = arith.mulf %79, %80 : vector<8x8xf32>
    %82 = vector.broadcast %75 : vector<1x8xf32> to vector<8x8xf32>
    %83 = arith.addf %81, %82 : vector<8x8xf32>
    %cst_67 = arith.constant dense<0xFF800000> : vector<8xf32>
    %84 = vector.multi_reduction <maximumf>, %83, %cst_67 [1] : vector<8x8xf32> to vector<8xf32>
    %85 = vector.shape_cast %84 : vector<8xf32> to vector<8x1xf32>
    %86 = vector.broadcast %85 : vector<8x1xf32> to vector<8x8xf32>
    %87 = arith.subf %83, %86 : vector<8x8xf32>
    %88 = math.exp %87 : vector<8x8xf32>
    %cst_68 = arith.constant dense<0.000000e+00> : vector<8xf32>
    %89 = vector.multi_reduction <add>, %88, %cst_68 [1] : vector<8x8xf32> to vector<8xf32>
    %90 = vector.shape_cast %89 : vector<8xf32> to vector<8x1xf32>
    %91 = tpu.reciprocal %90 {approx = true} : vector<8x1xf32> -> vector<8x1xf32>
    %92 = vector.broadcast %91 : vector<8x1xf32> to vector<8x8xf32>
    %93 = arith.mulf %88, %92 : vector<8x8xf32>
    %94 = arith.truncf %93 : vector<8x8xf32> to vector<8x8xbf16>
    %cst_69 = arith.constant dense<0.000000e+00> : vector<8x16xf32>
    %95 = tpu.matmul %94, %78, %cst_69 {dimension_numbers = #tpu.dot_dimension_numbers<[1], [0], [0], [1], [0, 0, 1, 1], [], []>} : vector<8x8xbf16>, vector<8x16xbf16>, vector<8x16xf32> -> vector<8x16xf32>
    %96 = arith.truncf %95 : vector<8x16xf32> to vector<8x16xbf16>
    %c0_70 = arith.constant 0 : index
    %c0_71 = arith.constant 0 : index
    %c0_72 = arith.constant 0 : index
    %c0_73 = arith.constant 0 : index
    %97 = vector.load %arg10[%c0_70, %c0_71, %c0_72, %c0_73] : memref<2x2x16x32xbf16, #tpu.memory_space<vmem>>, vector<1x1x16x32xbf16>
    %98 = vector.shape_cast %97 : vector<1x1x16x32xbf16> to vector<16x32xbf16>
    %cst_74 = arith.constant dense<0.000000e+00> : vector<8x32xf32>
    %99 = tpu.matmul %96, %98, %cst_74 {dimension_numbers = #tpu.dot_dimension_numbers<[1], [0], [0], [1], [0, 0, 1, 1], [], []>} : vector<8x16xbf16>, vector<16x32xbf16>, vector<8x32xf32> -> vector<8x32xf32>
    %100 = vector.extract_strided_slice %57 {offsets = [0, 0], sizes = [8, 16], strides = [1, 1]} : vector<16x16xbf16> to vector<8x16xbf16>
    %101 = vector.extract_strided_slice %65 {offsets = [0, 0], sizes = [8, 16], strides = [1, 1]} : vector<16x16xbf16> to vector<8x16xbf16>
    %102 = vector.extract_strided_slice %73 {offsets = [0, 0], sizes = [8, 16], strides = [1, 1]} : vector<16x16xbf16> to vector<8x16xbf16>
    %cst_75 = arith.constant dense<0.000000e+00> : vector<8x8xf32>
    %103 = tpu.matmul %100, %101, %cst_75 {dimension_numbers = #tpu.dot_dimension_numbers<[1], [1], [0], [0], [0, 0, 1, 0], [], []>} : vector<8x16xbf16>, vector<8x16xbf16>, vector<8x8xf32> -> vector<8x8xf32>
    %cst_76 = arith.constant 2.500000e-01 : f32
    %104 = vector.broadcast %cst_76 : f32 to vector<8x8xf32>
    %105 = arith.mulf %103, %104 : vector<8x8xf32>
    %106 = vector.broadcast %75 : vector<1x8xf32> to vector<8x8xf32>
    %107 = arith.addf %105, %106 : vector<8x8xf32>
    %cst_77 = arith.constant dense<0xFF800000> : vector<8xf32>
    %108 = vector.multi_reduction <maximumf>, %107, %cst_77 [1] : vector<8x8xf32> to vector<8xf32>
    %109 = vector.shape_cast %108 : vector<8xf32> to vector<8x1xf32>
    %110 = vector.broadcast %109 : vector<8x1xf32> to vector<8x8xf32>
    %111 = arith.subf %107, %110 : vector<8x8xf32>
    %112 = math.exp %111 : vector<8x8xf32>
    %cst_78 = arith.constant dense<0.000000e+00> : vector<8xf32>
    %113 = vector.multi_reduction <add>, %112, %cst_78 [1] : vector<8x8xf32> to vector<8xf32>
    %114 = vector.shape_cast %113 : vector<8xf32> to vector<8x1xf32>
    %115 = tpu.reciprocal %114 {approx = true} : vector<8x1xf32> -> vector<8x1xf32>
    %116 = vector.broadcast %115 : vector<8x1xf32> to vector<8x8xf32>
    %117 = arith.mulf %112, %116 : vector<8x8xf32>
    %118 = arith.truncf %117 : vector<8x8xf32> to vector<8x8xbf16>
    %cst_79 = arith.constant dense<0.000000e+00> : vector<8x16xf32>
    %119 = tpu.matmul %118, %102, %cst_79 {dimension_numbers = #tpu.dot_dimension_numbers<[1], [0], [0], [1], [0, 0, 1, 1], [], []>} : vector<8x8xbf16>, vector<8x16xbf16>, vector<8x16xf32> -> vector<8x16xf32>
    %120 = arith.truncf %119 : vector<8x16xf32> to vector<8x16xbf16>
    %c0_80 = arith.constant 0 : index
    %c1_81 = arith.constant 1 : index
    %c0_82 = arith.constant 0 : index
    %c0_83 = arith.constant 0 : index
    %121 = vector.load %arg10[%c0_80, %c1_81, %c0_82, %c0_83] : memref<2x2x16x32xbf16, #tpu.memory_space<vmem>>, vector<1x1x16x32xbf16>
    %122 = vector.shape_cast %121 : vector<1x1x16x32xbf16> to vector<16x32xbf16>
    %cst_84 = arith.constant dense<0.000000e+00> : vector<8x32xf32>
    %123 = tpu.matmul %120, %122, %cst_84 {dimension_numbers = #tpu.dot_dimension_numbers<[1], [0], [0], [1], [0, 0, 1, 1], [], []>} : vector<8x16xbf16>, vector<16x32xbf16>, vector<8x32xf32> -> vector<8x32xf32>
    %124 = arith.addf %99, %123 : vector<8x32xf32>
    %c1_85 = arith.constant 1 : index
    %c0_86 = arith.constant 0 : index
    %c0_87 = arith.constant 0 : index
    %125 = vector.load %arg1[%c1_85, %c0_86, %c0_87] : memref<2x1x8xf32, #tpu.memory_space<vmem>>, vector<1x1x8xf32>
    %126 = vector.shape_cast %125 : vector<1x1x8xf32> to vector<1x8xf32>
    %127 = vector.extract_strided_slice %33 {offsets = [8, 0], sizes = [8, 16], strides = [1, 1]} : vector<16x16xbf16> to vector<8x16xbf16>
    %128 = vector.extract_strided_slice %41 {offsets = [8, 0], sizes = [8, 16], strides = [1, 1]} : vector<16x16xbf16> to vector<8x16xbf16>
    %129 = vector.extract_strided_slice %49 {offsets = [8, 0], sizes = [8, 16], strides = [1, 1]} : vector<16x16xbf16> to vector<8x16xbf16>
    %cst_88 = arith.constant dense<0.000000e+00> : vector<8x8xf32>
    %130 = tpu.matmul %127, %128, %cst_88 {dimension_numbers = #tpu.dot_dimension_numbers<[1], [1], [0], [0], [0, 0, 1, 0], [], []>} : vector<8x16xbf16>, vector<8x16xbf16>, vector<8x8xf32> -> vector<8x8xf32>
    %cst_89 = arith.constant 2.500000e-01 : f32
    %131 = vector.broadcast %cst_89 : f32 to vector<8x8xf32>
    %132 = arith.mulf %130, %131 : vector<8x8xf32>
    %133 = vector.broadcast %126 : vector<1x8xf32> to vector<8x8xf32>
    %134 = arith.addf %132, %133 : vector<8x8xf32>
    %cst_90 = arith.constant dense<0xFF800000> : vector<8xf32>
    %135 = vector.multi_reduction <maximumf>, %134, %cst_90 [1] : vector<8x8xf32> to vector<8xf32>
    %136 = vector.shape_cast %135 : vector<8xf32> to vector<8x1xf32>
    %137 = vector.broadcast %136 : vector<8x1xf32> to vector<8x8xf32>
    %138 = arith.subf %134, %137 : vector<8x8xf32>
    %139 = math.exp %138 : vector<8x8xf32>
    %cst_91 = arith.constant dense<0.000000e+00> : vector<8xf32>
    %140 = vector.multi_reduction <add>, %139, %cst_91 [1] : vector<8x8xf32> to vector<8xf32>
    %141 = vector.shape_cast %140 : vector<8xf32> to vector<8x1xf32>
    %142 = tpu.reciprocal %141 {approx = true} : vector<8x1xf32> -> vector<8x1xf32>
    %143 = vector.broadcast %142 : vector<8x1xf32> to vector<8x8xf32>
    %144 = arith.mulf %139, %143 : vector<8x8xf32>
    %145 = arith.truncf %144 : vector<8x8xf32> to vector<8x8xbf16>
    %cst_92 = arith.constant dense<0.000000e+00> : vector<8x16xf32>
    %146 = tpu.matmul %145, %129, %cst_92 {dimension_numbers = #tpu.dot_dimension_numbers<[1], [0], [0], [1], [0, 0, 1, 1], [], []>} : vector<8x8xbf16>, vector<8x16xbf16>, vector<8x16xf32> -> vector<8x16xf32>
    %147 = arith.truncf %146 : vector<8x16xf32> to vector<8x16xbf16>
    %c0_93 = arith.constant 0 : index
    %c0_94 = arith.constant 0 : index
    %c0_95 = arith.constant 0 : index
    %c0_96 = arith.constant 0 : index
    %148 = vector.load %arg10[%c0_93, %c0_94, %c0_95, %c0_96] : memref<2x2x16x32xbf16, #tpu.memory_space<vmem>>, vector<1x1x16x32xbf16>
    %149 = vector.shape_cast %148 : vector<1x1x16x32xbf16> to vector<16x32xbf16>
    %cst_97 = arith.constant dense<0.000000e+00> : vector<8x32xf32>
    %150 = tpu.matmul %147, %149, %cst_97 {dimension_numbers = #tpu.dot_dimension_numbers<[1], [0], [0], [1], [0, 0, 1, 1], [], []>} : vector<8x16xbf16>, vector<16x32xbf16>, vector<8x32xf32> -> vector<8x32xf32>
    %151 = vector.extract_strided_slice %57 {offsets = [8, 0], sizes = [8, 16], strides = [1, 1]} : vector<16x16xbf16> to vector<8x16xbf16>
    %152 = vector.extract_strided_slice %65 {offsets = [8, 0], sizes = [8, 16], strides = [1, 1]} : vector<16x16xbf16> to vector<8x16xbf16>
    %153 = vector.extract_strided_slice %73 {offsets = [8, 0], sizes = [8, 16], strides = [1, 1]} : vector<16x16xbf16> to vector<8x16xbf16>
    %cst_98 = arith.constant dense<0.000000e+00> : vector<8x8xf32>
    %154 = tpu.matmul %151, %152, %cst_98 {dimension_numbers = #tpu.dot_dimension_numbers<[1], [1], [0], [0], [0, 0, 1, 0], [], []>} : vector<8x16xbf16>, vector<8x16xbf16>, vector<8x8xf32> -> vector<8x8xf32>
    %cst_99 = arith.constant 2.500000e-01 : f32
    %155 = vector.broadcast %cst_99 : f32 to vector<8x8xf32>
    %156 = arith.mulf %154, %155 : vector<8x8xf32>
    %157 = vector.broadcast %126 : vector<1x8xf32> to vector<8x8xf32>
    %158 = arith.addf %156, %157 : vector<8x8xf32>
    %cst_100 = arith.constant dense<0xFF800000> : vector<8xf32>
    %159 = vector.multi_reduction <maximumf>, %158, %cst_100 [1] : vector<8x8xf32> to vector<8xf32>
    %160 = vector.shape_cast %159 : vector<8xf32> to vector<8x1xf32>
    %161 = vector.broadcast %160 : vector<8x1xf32> to vector<8x8xf32>
    %162 = arith.subf %158, %161 : vector<8x8xf32>
    %163 = math.exp %162 : vector<8x8xf32>
    %cst_101 = arith.constant dense<0.000000e+00> : vector<8xf32>
    %164 = vector.multi_reduction <add>, %163, %cst_101 [1] : vector<8x8xf32> to vector<8xf32>
    %165 = vector.shape_cast %164 : vector<8xf32> to vector<8x1xf32>
    %166 = tpu.reciprocal %165 {approx = true} : vector<8x1xf32> -> vector<8x1xf32>
    %167 = vector.broadcast %166 : vector<8x1xf32> to vector<8x8xf32>
    %168 = arith.mulf %163, %167 : vector<8x8xf32>
    %169 = arith.truncf %168 : vector<8x8xf32> to vector<8x8xbf16>
    %cst_102 = arith.constant dense<0.000000e+00> : vector<8x16xf32>
    %170 = tpu.matmul %169, %153, %cst_102 {dimension_numbers = #tpu.dot_dimension_numbers<[1], [0], [0], [1], [0, 0, 1, 1], [], []>} : vector<8x8xbf16>, vector<8x16xbf16>, vector<8x16xf32> -> vector<8x16xf32>
    %171 = arith.truncf %170 : vector<8x16xf32> to vector<8x16xbf16>
    %c0_103 = arith.constant 0 : index
    %c1_104 = arith.constant 1 : index
    %c0_105 = arith.constant 0 : index
    %c0_106 = arith.constant 0 : index
    %172 = vector.load %arg10[%c0_103, %c1_104, %c0_105, %c0_106] : memref<2x2x16x32xbf16, #tpu.memory_space<vmem>>, vector<1x1x16x32xbf16>
    %173 = vector.shape_cast %172 : vector<1x1x16x32xbf16> to vector<16x32xbf16>
    %cst_107 = arith.constant dense<0.000000e+00> : vector<8x32xf32>
    %174 = tpu.matmul %171, %173, %cst_107 {dimension_numbers = #tpu.dot_dimension_numbers<[1], [0], [0], [1], [0, 0, 1, 1], [], []>} : vector<8x16xbf16>, vector<16x32xbf16>, vector<8x32xf32> -> vector<8x32xf32>
    %175 = arith.addf %150, %174 : vector<8x32xf32>
    %176 = tpu.concatenate %124, %175 in 0 : vector<8x32xf32>, vector<8x32xf32> -> vector<16x32xf32>
    %c0_108 = arith.constant 0 : index
    %c0_109 = arith.constant 0 : index
    %c0_110 = arith.constant 0 : index
    %177 = vector.load %arg11[%c0_108, %c0_109, %c0_110] : memref<2x1x32xf32, #tpu.memory_space<vmem>>, vector<1x1x32xf32>
    %178 = vector.shape_cast %177 : vector<1x1x32xf32> to vector<1x32xf32>
    %179 = vector.broadcast %178 : vector<1x32xf32> to vector<16x32xf32>
    %180 = arith.addf %176, %179 : vector<16x32xf32>
    %181 = arith.addf %180, %24 : vector<16x32xf32>
    %c0_111 = arith.constant 0 : index
    %c0_112 = arith.constant 0 : index
    %c0_113 = arith.constant 0 : index
    %182 = vector.load %arg12[%c0_111, %c0_112, %c0_113] : memref<2x1x32xf32, #tpu.memory_space<vmem>>, vector<1x1x32xf32>
    %183 = vector.shape_cast %182 : vector<1x1x32xf32> to vector<1x32xf32>
    %c0_114 = arith.constant 0 : index
    %c0_115 = arith.constant 0 : index
    %c0_116 = arith.constant 0 : index
    %184 = vector.load %arg13[%c0_114, %c0_115, %c0_116] : memref<2x1x32xf32, #tpu.memory_space<vmem>>, vector<1x1x32xf32>
    %185 = vector.shape_cast %184 : vector<1x1x32xf32> to vector<1x32xf32>
    %cst_117 = arith.constant dense<0.000000e+00> : vector<16xf32>
    %186 = vector.multi_reduction <add>, %181, %cst_117 [1] : vector<16x32xf32> to vector<16xf32>
    %187 = vector.shape_cast %186 : vector<16xf32> to vector<16x1xf32>
    %cst_118 = arith.constant 3.200000e+01 : f32
    %188 = vector.broadcast %cst_118 : f32 to vector<16x1xf32>
    %189 = arith.divf %187, %188 : vector<16x1xf32>
    %190 = vector.broadcast %189 : vector<16x1xf32> to vector<16x32xf32>
    %191 = arith.subf %181, %190 : vector<16x32xf32>
    %192 = arith.mulf %191, %191 : vector<16x32xf32>
    %cst_119 = arith.constant dense<0.000000e+00> : vector<16xf32>
    %193 = vector.multi_reduction <add>, %192, %cst_119 [1] : vector<16x32xf32> to vector<16xf32>
    %194 = vector.shape_cast %193 : vector<16xf32> to vector<16x1xf32>
    %cst_120 = arith.constant 3.200000e+01 : f32
    %195 = vector.broadcast %cst_120 : f32 to vector<16x1xf32>
    %196 = arith.divf %194, %195 : vector<16x1xf32>
    %197 = vector.broadcast %189 : vector<16x1xf32> to vector<16x32xf32>
    %198 = arith.subf %181, %197 : vector<16x32xf32>
    %cst_121 = arith.constant 9.99999996E-13 : f32
    %199 = vector.broadcast %cst_121 : f32 to vector<16x1xf32>
    %200 = arith.addf %196, %199 : vector<16x1xf32>
    %201 = math.rsqrt %200 : vector<16x1xf32>
    %202 = vector.broadcast %201 : vector<16x1xf32> to vector<16x32xf32>
    %203 = arith.mulf %198, %202 : vector<16x32xf32>
    %204 = vector.broadcast %183 : vector<1x32xf32> to vector<16x32xf32>
    %205 = arith.mulf %203, %204 : vector<16x32xf32>
    %206 = vector.broadcast %185 : vector<1x32xf32> to vector<16x32xf32>
    %207 = arith.addf %205, %206 : vector<16x32xf32>
    %208 = arith.truncf %207 : vector<16x32xf32> to vector<16x32xbf16>
    %c0_122 = arith.constant 0 : index
    %c0_123 = arith.constant 0 : index
    %c0_124 = arith.constant 0 : index
    %209 = vector.load %arg14[%c0_122, %c0_123, %c0_124] : memref<2x32x64xbf16, #tpu.memory_space<vmem>>, vector<1x32x64xbf16>
    %210 = vector.shape_cast %209 : vector<1x32x64xbf16> to vector<32x64xbf16>
    %cst_125 = arith.constant dense<0.000000e+00> : vector<16x64xf32>
    %211 = tpu.matmul %208, %210, %cst_125 {dimension_numbers = #tpu.dot_dimension_numbers<[1], [0], [0], [1], [0, 0, 1, 1], [], []>} : vector<16x32xbf16>, vector<32x64xbf16>, vector<16x64xf32> -> vector<16x64xf32>
    %c0_126 = arith.constant 0 : index
    %c0_127 = arith.constant 0 : index
    %c0_128 = arith.constant 0 : index
    %212 = vector.load %arg15[%c0_126, %c0_127, %c0_128] : memref<2x1x64xf32, #tpu.memory_space<vmem>>, vector<1x1x64xf32>
    %213 = vector.shape_cast %212 : vector<1x1x64xf32> to vector<1x64xf32>
    %214 = vector.broadcast %213 : vector<1x64xf32> to vector<16x64xf32>
    %215 = arith.addf %211, %214 : vector<16x64xf32>
    %216 = arith.mulf %215, %215 : vector<16x64xf32>
    %217 = arith.mulf %215, %216 : vector<16x64xf32>
    %cst_129 = arith.constant 4.471500e-02 : f32
    %218 = vector.broadcast %cst_129 : f32 to vector<16x64xf32>
    %219 = arith.mulf %218, %217 : vector<16x64xf32>
    %220 = arith.addf %215, %219 : vector<16x64xf32>
    %cst_130 = arith.constant 0.797884583 : f32
    %221 = vector.broadcast %cst_130 : f32 to vector<16x64xf32>
    %222 = arith.mulf %221, %220 : vector<16x64xf32>
    %223 = math.tanh %222 : vector<16x64xf32>
    %cst_131 = arith.constant 1.000000e+00 : f32
    %224 = vector.broadcast %cst_131 : f32 to vector<16x64xf32>
    %225 = arith.addf %224, %223 : vector<16x64xf32>
    %cst_132 = arith.constant 5.000000e-01 : f32
    %226 = vector.broadcast %cst_132 : f32 to vector<16x64xf32>
    %227 = arith.mulf %226, %225 : vector<16x64xf32>
    %228 = arith.mulf %215, %227 : vector<16x64xf32>
    %229 = arith.truncf %228 : vector<16x64xf32> to vector<16x64xbf16>
    %c0_133 = arith.constant 0 : index
    %c0_134 = arith.constant 0 : index
    %c0_135 = arith.constant 0 : index
    %230 = vector.load %arg16[%c0_133, %c0_134, %c0_135] : memref<2x64x32xbf16, #tpu.memory_space<vmem>>, vector<1x64x32xbf16>
    %231 = vector.shape_cast %230 : vector<1x64x32xbf16> to vector<64x32xbf16>
    %cst_136 = arith.constant dense<0.000000e+00> : vector<16x32xf32>
    %232 = tpu.matmul %229, %231, %cst_136 {dimension_numbers = #tpu.dot_dimension_numbers<[1], [0], [0], [1], [0, 0, 1, 1], [], []>} : vector<16x64xbf16>, vector<64x32xbf16>, vector<16x32xf32> -> vector<16x32xf32>
    %c0_137 = arith.constant 0 : index
    %c0_138 = arith.constant 0 : index
    %c0_139 = arith.constant 0 : index
    %233 = vector.load %arg17[%c0_137, %c0_138, %c0_139] : memref<2x1x32xf32, #tpu.memory_space<vmem>>, vector<1x1x32xf32>
    %234 = vector.shape_cast %233 : vector<1x1x32xf32> to vector<1x32xf32>
    %235 = vector.broadcast %234 : vector<1x32xf32> to vector<16x32xf32>
    %236 = arith.addf %232, %235 : vector<16x32xf32>
    %237 = arith.addf %236, %207 : vector<16x32xf32>
    %c0_140 = arith.constant 0 : index
    %c0_141 = arith.constant 0 : index
    %c0_142 = arith.constant 0 : index
    %238 = vector.load %arg18[%c0_140, %c0_141, %c0_142] : memref<2x1x32xf32, #tpu.memory_space<vmem>>, vector<1x1x32xf32>
    %239 = vector.shape_cast %238 : vector<1x1x32xf32> to vector<1x32xf32>
    %c0_143 = arith.constant 0 : index
    %c0_144 = arith.constant 0 : index
    %c0_145 = arith.constant 0 : index
    %240 = vector.load %arg19[%c0_143, %c0_144, %c0_145] : memref<2x1x32xf32, #tpu.memory_space<vmem>>, vector<1x1x32xf32>
    %241 = vector.shape_cast %240 : vector<1x1x32xf32> to vector<1x32xf32>
    %cst_146 = arith.constant dense<0.000000e+00> : vector<16xf32>
    %242 = vector.multi_reduction <add>, %237, %cst_146 [1] : vector<16x32xf32> to vector<16xf32>
    %243 = vector.shape_cast %242 : vector<16xf32> to vector<16x1xf32>
    %cst_147 = arith.constant 3.200000e+01 : f32
    %244 = vector.broadcast %cst_147 : f32 to vector<16x1xf32>
    %245 = arith.divf %243, %244 : vector<16x1xf32>
    %246 = vector.broadcast %245 : vector<16x1xf32> to vector<16x32xf32>
    %247 = arith.subf %237, %246 : vector<16x32xf32>
    %248 = arith.mulf %247, %247 : vector<16x32xf32>
    %cst_148 = arith.constant dense<0.000000e+00> : vector<16xf32>
    %249 = vector.multi_reduction <add>, %248, %cst_148 [1] : vector<16x32xf32> to vector<16xf32>
    %250 = vector.shape_cast %249 : vector<16xf32> to vector<16x1xf32>
    %cst_149 = arith.constant 3.200000e+01 : f32
    %251 = vector.broadcast %cst_149 : f32 to vector<16x1xf32>
    %252 = arith.divf %250, %251 : vector<16x1xf32>
    %253 = vector.broadcast %245 : vector<16x1xf32> to vector<16x32xf32>
    %254 = arith.subf %237, %253 : vector<16x32xf32>
    %cst_150 = arith.constant 9.99999996E-13 : f32
    %255 = vector.broadcast %cst_150 : f32 to vector<16x1xf32>
    %256 = arith.addf %252, %255 : vector<16x1xf32>
    %257 = math.rsqrt %256 : vector<16x1xf32>
    %258 = vector.broadcast %257 : vector<16x1xf32> to vector<16x32xf32>
    %259 = arith.mulf %254, %258 : vector<16x32xf32>
    %260 = vector.broadcast %239 : vector<1x32xf32> to vector<16x32xf32>
    %261 = arith.mulf %259, %260 : vector<16x32xf32>
    %262 = vector.broadcast %241 : vector<1x32xf32> to vector<16x32xf32>
    %263 = arith.addf %261, %262 : vector<16x32xf32>
    %264 = arith.truncf %263 : vector<16x32xf32> to vector<16x32xbf16>
    %c1_151 = arith.constant 1 : index
    %c0_152 = arith.constant 0 : index
    %c0_153 = arith.constant 0 : index
    %c0_154 = arith.constant 0 : index
    %265 = vector.load %arg4[%c1_151, %c0_152, %c0_153, %c0_154] : memref<2x2x32x16xbf16, #tpu.memory_space<vmem>>, vector<1x1x32x16xbf16>
    %266 = vector.shape_cast %265 : vector<1x1x32x16xbf16> to vector<32x16xbf16>
    %cst_155 = arith.constant dense<0.000000e+00> : vector<16x16xf32>
    %267 = tpu.matmul %264, %266, %cst_155 {dimension_numbers = #tpu.dot_dimension_numbers<[1], [0], [0], [1], [0, 0, 1, 1], [], []>} : vector<16x32xbf16>, vector<32x16xbf16>, vector<16x16xf32> -> vector<16x16xf32>
    %c1_156 = arith.constant 1 : index
    %c0_157 = arith.constant 0 : index
    %c0_158 = arith.constant 0 : index
    %c0_159 = arith.constant 0 : index
    %268 = vector.load %arg5[%c1_156, %c0_157, %c0_158, %c0_159] : memref<2x2x1x16xf32, #tpu.memory_space<vmem>>, vector<1x1x1x16xf32>
    %269 = vector.shape_cast %268 : vector<1x1x1x16xf32> to vector<1x16xf32>
    %270 = vector.broadcast %269 : vector<1x16xf32> to vector<16x16xf32>
    %271 = arith.addf %267, %270 : vector<16x16xf32>
    %272 = arith.truncf %271 : vector<16x16xf32> to vector<16x16xbf16>
    %c1_160 = arith.constant 1 : index
    %c0_161 = arith.constant 0 : index
    %c0_162 = arith.constant 0 : index
    %c0_163 = arith.constant 0 : index
    %273 = vector.load %arg6[%c1_160, %c0_161, %c0_162, %c0_163] : memref<2x2x32x16xbf16, #tpu.memory_space<vmem>>, vector<1x1x32x16xbf16>
    %274 = vector.shape_cast %273 : vector<1x1x32x16xbf16> to vector<32x16xbf16>
    %cst_164 = arith.constant dense<0.000000e+00> : vector<16x16xf32>
    %275 = tpu.matmul %264, %274, %cst_164 {dimension_numbers = #tpu.dot_dimension_numbers<[1], [0], [0], [1], [0, 0, 1, 1], [], []>} : vector<16x32xbf16>, vector<32x16xbf16>, vector<16x16xf32> -> vector<16x16xf32>
    %c1_165 = arith.constant 1 : index
    %c0_166 = arith.constant 0 : index
    %c0_167 = arith.constant 0 : index
    %c0_168 = arith.constant 0 : index
    %276 = vector.load %arg7[%c1_165, %c0_166, %c0_167, %c0_168] : memref<2x2x1x16xf32, #tpu.memory_space<vmem>>, vector<1x1x1x16xf32>
    %277 = vector.shape_cast %276 : vector<1x1x1x16xf32> to vector<1x16xf32>
    %278 = vector.broadcast %277 : vector<1x16xf32> to vector<16x16xf32>
    %279 = arith.addf %275, %278 : vector<16x16xf32>
    %280 = arith.truncf %279 : vector<16x16xf32> to vector<16x16xbf16>
    %c1_169 = arith.constant 1 : index
    %c0_170 = arith.constant 0 : index
    %c0_171 = arith.constant 0 : index
    %c0_172 = arith.constant 0 : index
    %281 = vector.load %arg8[%c1_169, %c0_170, %c0_171, %c0_172] : memref<2x2x32x16xbf16, #tpu.memory_space<vmem>>, vector<1x1x32x16xbf16>
    %282 = vector.shape_cast %281 : vector<1x1x32x16xbf16> to vector<32x16xbf16>
    %cst_173 = arith.constant dense<0.000000e+00> : vector<16x16xf32>
    %283 = tpu.matmul %264, %282, %cst_173 {dimension_numbers = #tpu.dot_dimension_numbers<[1], [0], [0], [1], [0, 0, 1, 1], [], []>} : vector<16x32xbf16>, vector<32x16xbf16>, vector<16x16xf32> -> vector<16x16xf32>
    %c1_174 = arith.constant 1 : index
    %c0_175 = arith.constant 0 : index
    %c0_176 = arith.constant 0 : index
    %c0_177 = arith.constant 0 : index
    %284 = vector.load %arg9[%c1_174, %c0_175, %c0_176, %c0_177] : memref<2x2x1x16xf32, #tpu.memory_space<vmem>>, vector<1x1x1x16xf32>
    %285 = vector.shape_cast %284 : vector<1x1x1x16xf32> to vector<1x16xf32>
    %286 = vector.broadcast %285 : vector<1x16xf32> to vector<16x16xf32>
    %287 = arith.addf %283, %286 : vector<16x16xf32>
    %288 = arith.truncf %287 : vector<16x16xf32> to vector<16x16xbf16>
    %c1_178 = arith.constant 1 : index
    %c1_179 = arith.constant 1 : index
    %c0_180 = arith.constant 0 : index
    %c0_181 = arith.constant 0 : index
    %289 = vector.load %arg4[%c1_178, %c1_179, %c0_180, %c0_181] : memref<2x2x32x16xbf16, #tpu.memory_space<vmem>>, vector<1x1x32x16xbf16>
    %290 = vector.shape_cast %289 : vector<1x1x32x16xbf16> to vector<32x16xbf16>
    %cst_182 = arith.constant dense<0.000000e+00> : vector<16x16xf32>
    %291 = tpu.matmul %264, %290, %cst_182 {dimension_numbers = #tpu.dot_dimension_numbers<[1], [0], [0], [1], [0, 0, 1, 1], [], []>} : vector<16x32xbf16>, vector<32x16xbf16>, vector<16x16xf32> -> vector<16x16xf32>
    %c1_183 = arith.constant 1 : index
    %c1_184 = arith.constant 1 : index
    %c0_185 = arith.constant 0 : index
    %c0_186 = arith.constant 0 : index
    %292 = vector.load %arg5[%c1_183, %c1_184, %c0_185, %c0_186] : memref<2x2x1x16xf32, #tpu.memory_space<vmem>>, vector<1x1x1x16xf32>
    %293 = vector.shape_cast %292 : vector<1x1x1x16xf32> to vector<1x16xf32>
    %294 = vector.broadcast %293 : vector<1x16xf32> to vector<16x16xf32>
    %295 = arith.addf %291, %294 : vector<16x16xf32>
    %296 = arith.truncf %295 : vector<16x16xf32> to vector<16x16xbf16>
    %c1_187 = arith.constant 1 : index
    %c1_188 = arith.constant 1 : index
    %c0_189 = arith.constant 0 : index
    %c0_190 = arith.constant 0 : index
    %297 = vector.load %arg6[%c1_187, %c1_188, %c0_189, %c0_190] : memref<2x2x32x16xbf16, #tpu.memory_space<vmem>>, vector<1x1x32x16xbf16>
    %298 = vector.shape_cast %297 : vector<1x1x32x16xbf16> to vector<32x16xbf16>
    %cst_191 = arith.constant dense<0.000000e+00> : vector<16x16xf32>
    %299 = tpu.matmul %264, %298, %cst_191 {dimension_numbers = #tpu.dot_dimension_numbers<[1], [0], [0], [1], [0, 0, 1, 1], [], []>} : vector<16x32xbf16>, vector<32x16xbf16>, vector<16x16xf32> -> vector<16x16xf32>
    %c1_192 = arith.constant 1 : index
    %c1_193 = arith.constant 1 : index
    %c0_194 = arith.constant 0 : index
    %c0_195 = arith.constant 0 : index
    %300 = vector.load %arg7[%c1_192, %c1_193, %c0_194, %c0_195] : memref<2x2x1x16xf32, #tpu.memory_space<vmem>>, vector<1x1x1x16xf32>
    %301 = vector.shape_cast %300 : vector<1x1x1x16xf32> to vector<1x16xf32>
    %302 = vector.broadcast %301 : vector<1x16xf32> to vector<16x16xf32>
    %303 = arith.addf %299, %302 : vector<16x16xf32>
    %304 = arith.truncf %303 : vector<16x16xf32> to vector<16x16xbf16>
    %c1_196 = arith.constant 1 : index
    %c1_197 = arith.constant 1 : index
    %c0_198 = arith.constant 0 : index
    %c0_199 = arith.constant 0 : index
    %305 = vector.load %arg8[%c1_196, %c1_197, %c0_198, %c0_199] : memref<2x2x32x16xbf16, #tpu.memory_space<vmem>>, vector<1x1x32x16xbf16>
    %306 = vector.shape_cast %305 : vector<1x1x32x16xbf16> to vector<32x16xbf16>
    %cst_200 = arith.constant dense<0.000000e+00> : vector<16x16xf32>
    %307 = tpu.matmul %264, %306, %cst_200 {dimension_numbers = #tpu.dot_dimension_numbers<[1], [0], [0], [1], [0, 0, 1, 1], [], []>} : vector<16x32xbf16>, vector<32x16xbf16>, vector<16x16xf32> -> vector<16x16xf32>
    %c1_201 = arith.constant 1 : index
    %c1_202 = arith.constant 1 : index
    %c0_203 = arith.constant 0 : index
    %c0_204 = arith.constant 0 : index
    %308 = vector.load %arg9[%c1_201, %c1_202, %c0_203, %c0_204] : memref<2x2x1x16xf32, #tpu.memory_space<vmem>>, vector<1x1x1x16xf32>
    %309 = vector.shape_cast %308 : vector<1x1x1x16xf32> to vector<1x16xf32>
    %310 = vector.broadcast %309 : vector<1x16xf32> to vector<16x16xf32>
    %311 = arith.addf %307, %310 : vector<16x16xf32>
    %312 = arith.truncf %311 : vector<16x16xf32> to vector<16x16xbf16>
    %c0_205 = arith.constant 0 : index
    %c0_206 = arith.constant 0 : index
    %c0_207 = arith.constant 0 : index
    %313 = vector.load %arg1[%c0_205, %c0_206, %c0_207] : memref<2x1x8xf32, #tpu.memory_space<vmem>>, vector<1x1x8xf32>
    %314 = vector.shape_cast %313 : vector<1x1x8xf32> to vector<1x8xf32>
    %315 = vector.extract_strided_slice %272 {offsets = [0, 0], sizes = [8, 16], strides = [1, 1]} : vector<16x16xbf16> to vector<8x16xbf16>
    %316 = vector.extract_strided_slice %280 {offsets = [0, 0], sizes = [8, 16], strides = [1, 1]} : vector<16x16xbf16> to vector<8x16xbf16>
    %317 = vector.extract_strided_slice %288 {offsets = [0, 0], sizes = [8, 16], strides = [1, 1]} : vector<16x16xbf16> to vector<8x16xbf16>
    %cst_208 = arith.constant dense<0.000000e+00> : vector<8x8xf32>
    %318 = tpu.matmul %315, %316, %cst_208 {dimension_numbers = #tpu.dot_dimension_numbers<[1], [1], [0], [0], [0, 0, 1, 0], [], []>} : vector<8x16xbf16>, vector<8x16xbf16>, vector<8x8xf32> -> vector<8x8xf32>
    %cst_209 = arith.constant 2.500000e-01 : f32
    %319 = vector.broadcast %cst_209 : f32 to vector<8x8xf32>
    %320 = arith.mulf %318, %319 : vector<8x8xf32>
    %321 = vector.broadcast %314 : vector<1x8xf32> to vector<8x8xf32>
    %322 = arith.addf %320, %321 : vector<8x8xf32>
    %cst_210 = arith.constant dense<0xFF800000> : vector<8xf32>
    %323 = vector.multi_reduction <maximumf>, %322, %cst_210 [1] : vector<8x8xf32> to vector<8xf32>
    %324 = vector.shape_cast %323 : vector<8xf32> to vector<8x1xf32>
    %325 = vector.broadcast %324 : vector<8x1xf32> to vector<8x8xf32>
    %326 = arith.subf %322, %325 : vector<8x8xf32>
    %327 = math.exp %326 : vector<8x8xf32>
    %cst_211 = arith.constant dense<0.000000e+00> : vector<8xf32>
    %328 = vector.multi_reduction <add>, %327, %cst_211 [1] : vector<8x8xf32> to vector<8xf32>
    %329 = vector.shape_cast %328 : vector<8xf32> to vector<8x1xf32>
    %330 = tpu.reciprocal %329 {approx = true} : vector<8x1xf32> -> vector<8x1xf32>
    %331 = vector.broadcast %330 : vector<8x1xf32> to vector<8x8xf32>
    %332 = arith.mulf %327, %331 : vector<8x8xf32>
    %333 = arith.truncf %332 : vector<8x8xf32> to vector<8x8xbf16>
    %cst_212 = arith.constant dense<0.000000e+00> : vector<8x16xf32>
    %334 = tpu.matmul %333, %317, %cst_212 {dimension_numbers = #tpu.dot_dimension_numbers<[1], [0], [0], [1], [0, 0, 1, 1], [], []>} : vector<8x8xbf16>, vector<8x16xbf16>, vector<8x16xf32> -> vector<8x16xf32>
    %335 = arith.truncf %334 : vector<8x16xf32> to vector<8x16xbf16>
    %c1_213 = arith.constant 1 : index
    %c0_214 = arith.constant 0 : index
    %c0_215 = arith.constant 0 : index
    %c0_216 = arith.constant 0 : index
    %336 = vector.load %arg10[%c1_213, %c0_214, %c0_215, %c0_216] : memref<2x2x16x32xbf16, #tpu.memory_space<vmem>>, vector<1x1x16x32xbf16>
    %337 = vector.shape_cast %336 : vector<1x1x16x32xbf16> to vector<16x32xbf16>
    %cst_217 = arith.constant dense<0.000000e+00> : vector<8x32xf32>
    %338 = tpu.matmul %335, %337, %cst_217 {dimension_numbers = #tpu.dot_dimension_numbers<[1], [0], [0], [1], [0, 0, 1, 1], [], []>} : vector<8x16xbf16>, vector<16x32xbf16>, vector<8x32xf32> -> vector<8x32xf32>
    %339 = vector.extract_strided_slice %296 {offsets = [0, 0], sizes = [8, 16], strides = [1, 1]} : vector<16x16xbf16> to vector<8x16xbf16>
    %340 = vector.extract_strided_slice %304 {offsets = [0, 0], sizes = [8, 16], strides = [1, 1]} : vector<16x16xbf16> to vector<8x16xbf16>
    %341 = vector.extract_strided_slice %312 {offsets = [0, 0], sizes = [8, 16], strides = [1, 1]} : vector<16x16xbf16> to vector<8x16xbf16>
    %cst_218 = arith.constant dense<0.000000e+00> : vector<8x8xf32>
    %342 = tpu.matmul %339, %340, %cst_218 {dimension_numbers = #tpu.dot_dimension_numbers<[1], [1], [0], [0], [0, 0, 1, 0], [], []>} : vector<8x16xbf16>, vector<8x16xbf16>, vector<8x8xf32> -> vector<8x8xf32>
    %cst_219 = arith.constant 2.500000e-01 : f32
    %343 = vector.broadcast %cst_219 : f32 to vector<8x8xf32>
    %344 = arith.mulf %342, %343 : vector<8x8xf32>
    %345 = vector.broadcast %314 : vector<1x8xf32> to vector<8x8xf32>
    %346 = arith.addf %344, %345 : vector<8x8xf32>
    %cst_220 = arith.constant dense<0xFF800000> : vector<8xf32>
    %347 = vector.multi_reduction <maximumf>, %346, %cst_220 [1] : vector<8x8xf32> to vector<8xf32>
    %348 = vector.shape_cast %347 : vector<8xf32> to vector<8x1xf32>
    %349 = vector.broadcast %348 : vector<8x1xf32> to vector<8x8xf32>
    %350 = arith.subf %346, %349 : vector<8x8xf32>
    %351 = math.exp %350 : vector<8x8xf32>
    %cst_221 = arith.constant dense<0.000000e+00> : vector<8xf32>
    %352 = vector.multi_reduction <add>, %351, %cst_221 [1] : vector<8x8xf32> to vector<8xf32>
    %353 = vector.shape_cast %352 : vector<8xf32> to vector<8x1xf32>
    %354 = tpu.reciprocal %353 {approx = true} : vector<8x1xf32> -> vector<8x1xf32>
    %355 = vector.broadcast %354 : vector<8x1xf32> to vector<8x8xf32>
    %356 = arith.mulf %351, %355 : vector<8x8xf32>
    %357 = arith.truncf %356 : vector<8x8xf32> to vector<8x8xbf16>
    %cst_222 = arith.constant dense<0.000000e+00> : vector<8x16xf32>
    %358 = tpu.matmul %357, %341, %cst_222 {dimension_numbers = #tpu.dot_dimension_numbers<[1], [0], [0], [1], [0, 0, 1, 1], [], []>} : vector<8x8xbf16>, vector<8x16xbf16>, vector<8x16xf32> -> vector<8x16xf32>
    %359 = arith.truncf %358 : vector<8x16xf32> to vector<8x16xbf16>
    %c1_223 = arith.constant 1 : index
    %c1_224 = arith.constant 1 : index
    %c0_225 = arith.constant 0 : index
    %c0_226 = arith.constant 0 : index
    %360 = vector.load %arg10[%c1_223, %c1_224, %c0_225, %c0_226] : memref<2x2x16x32xbf16, #tpu.memory_space<vmem>>, vector<1x1x16x32xbf16>
    %361 = vector.shape_cast %360 : vector<1x1x16x32xbf16> to vector<16x32xbf16>
    %cst_227 = arith.constant dense<0.000000e+00> : vector<8x32xf32>
    %362 = tpu.matmul %359, %361, %cst_227 {dimension_numbers = #tpu.dot_dimension_numbers<[1], [0], [0], [1], [0, 0, 1, 1], [], []>} : vector<8x16xbf16>, vector<16x32xbf16>, vector<8x32xf32> -> vector<8x32xf32>
    %363 = arith.addf %338, %362 : vector<8x32xf32>
    %c1_228 = arith.constant 1 : index
    %c0_229 = arith.constant 0 : index
    %c0_230 = arith.constant 0 : index
    %364 = vector.load %arg1[%c1_228, %c0_229, %c0_230] : memref<2x1x8xf32, #tpu.memory_space<vmem>>, vector<1x1x8xf32>
    %365 = vector.shape_cast %364 : vector<1x1x8xf32> to vector<1x8xf32>
    %366 = vector.extract_strided_slice %272 {offsets = [8, 0], sizes = [8, 16], strides = [1, 1]} : vector<16x16xbf16> to vector<8x16xbf16>
    %367 = vector.extract_strided_slice %280 {offsets = [8, 0], sizes = [8, 16], strides = [1, 1]} : vector<16x16xbf16> to vector<8x16xbf16>
    %368 = vector.extract_strided_slice %288 {offsets = [8, 0], sizes = [8, 16], strides = [1, 1]} : vector<16x16xbf16> to vector<8x16xbf16>
    %cst_231 = arith.constant dense<0.000000e+00> : vector<8x8xf32>
    %369 = tpu.matmul %366, %367, %cst_231 {dimension_numbers = #tpu.dot_dimension_numbers<[1], [1], [0], [0], [0, 0, 1, 0], [], []>} : vector<8x16xbf16>, vector<8x16xbf16>, vector<8x8xf32> -> vector<8x8xf32>
    %cst_232 = arith.constant 2.500000e-01 : f32
    %370 = vector.broadcast %cst_232 : f32 to vector<8x8xf32>
    %371 = arith.mulf %369, %370 : vector<8x8xf32>
    %372 = vector.broadcast %365 : vector<1x8xf32> to vector<8x8xf32>
    %373 = arith.addf %371, %372 : vector<8x8xf32>
    %cst_233 = arith.constant dense<0xFF800000> : vector<8xf32>
    %374 = vector.multi_reduction <maximumf>, %373, %cst_233 [1] : vector<8x8xf32> to vector<8xf32>
    %375 = vector.shape_cast %374 : vector<8xf32> to vector<8x1xf32>
    %376 = vector.broadcast %375 : vector<8x1xf32> to vector<8x8xf32>
    %377 = arith.subf %373, %376 : vector<8x8xf32>
    %378 = math.exp %377 : vector<8x8xf32>
    %cst_234 = arith.constant dense<0.000000e+00> : vector<8xf32>
    %379 = vector.multi_reduction <add>, %378, %cst_234 [1] : vector<8x8xf32> to vector<8xf32>
    %380 = vector.shape_cast %379 : vector<8xf32> to vector<8x1xf32>
    %381 = tpu.reciprocal %380 {approx = true} : vector<8x1xf32> -> vector<8x1xf32>
    %382 = vector.broadcast %381 : vector<8x1xf32> to vector<8x8xf32>
    %383 = arith.mulf %378, %382 : vector<8x8xf32>
    %384 = arith.truncf %383 : vector<8x8xf32> to vector<8x8xbf16>
    %cst_235 = arith.constant dense<0.000000e+00> : vector<8x16xf32>
    %385 = tpu.matmul %384, %368, %cst_235 {dimension_numbers = #tpu.dot_dimension_numbers<[1], [0], [0], [1], [0, 0, 1, 1], [], []>} : vector<8x8xbf16>, vector<8x16xbf16>, vector<8x16xf32> -> vector<8x16xf32>
    %386 = arith.truncf %385 : vector<8x16xf32> to vector<8x16xbf16>
    %c1_236 = arith.constant 1 : index
    %c0_237 = arith.constant 0 : index
    %c0_238 = arith.constant 0 : index
    %c0_239 = arith.constant 0 : index
    %387 = vector.load %arg10[%c1_236, %c0_237, %c0_238, %c0_239] : memref<2x2x16x32xbf16, #tpu.memory_space<vmem>>, vector<1x1x16x32xbf16>
    %388 = vector.shape_cast %387 : vector<1x1x16x32xbf16> to vector<16x32xbf16>
    %cst_240 = arith.constant dense<0.000000e+00> : vector<8x32xf32>
    %389 = tpu.matmul %386, %388, %cst_240 {dimension_numbers = #tpu.dot_dimension_numbers<[1], [0], [0], [1], [0, 0, 1, 1], [], []>} : vector<8x16xbf16>, vector<16x32xbf16>, vector<8x32xf32> -> vector<8x32xf32>
    %390 = vector.extract_strided_slice %296 {offsets = [8, 0], sizes = [8, 16], strides = [1, 1]} : vector<16x16xbf16> to vector<8x16xbf16>
    %391 = vector.extract_strided_slice %304 {offsets = [8, 0], sizes = [8, 16], strides = [1, 1]} : vector<16x16xbf16> to vector<8x16xbf16>
    %392 = vector.extract_strided_slice %312 {offsets = [8, 0], sizes = [8, 16], strides = [1, 1]} : vector<16x16xbf16> to vector<8x16xbf16>
    %cst_241 = arith.constant dense<0.000000e+00> : vector<8x8xf32>
    %393 = tpu.matmul %390, %391, %cst_241 {dimension_numbers = #tpu.dot_dimension_numbers<[1], [1], [0], [0], [0, 0, 1, 0], [], []>} : vector<8x16xbf16>, vector<8x16xbf16>, vector<8x8xf32> -> vector<8x8xf32>
    %cst_242 = arith.constant 2.500000e-01 : f32
    %394 = vector.broadcast %cst_242 : f32 to vector<8x8xf32>
    %395 = arith.mulf %393, %394 : vector<8x8xf32>
    %396 = vector.broadcast %365 : vector<1x8xf32> to vector<8x8xf32>
    %397 = arith.addf %395, %396 : vector<8x8xf32>
    %cst_243 = arith.constant dense<0xFF800000> : vector<8xf32>
    %398 = vector.multi_reduction <maximumf>, %397, %cst_243 [1] : vector<8x8xf32> to vector<8xf32>
    %399 = vector.shape_cast %398 : vector<8xf32> to vector<8x1xf32>
    %400 = vector.broadcast %399 : vector<8x1xf32> to vector<8x8xf32>
    %401 = arith.subf %397, %400 : vector<8x8xf32>
    %402 = math.exp %401 : vector<8x8xf32>
    %cst_244 = arith.constant dense<0.000000e+00> : vector<8xf32>
    %403 = vector.multi_reduction <add>, %402, %cst_244 [1] : vector<8x8xf32> to vector<8xf32>
    %404 = vector.shape_cast %403 : vector<8xf32> to vector<8x1xf32>
    %405 = tpu.reciprocal %404 {approx = true} : vector<8x1xf32> -> vector<8x1xf32>
    %406 = vector.broadcast %405 : vector<8x1xf32> to vector<8x8xf32>
    %407 = arith.mulf %402, %406 : vector<8x8xf32>
    %408 = arith.truncf %407 : vector<8x8xf32> to vector<8x8xbf16>
    %cst_245 = arith.constant dense<0.000000e+00> : vector<8x16xf32>
    %409 = tpu.matmul %408, %392, %cst_245 {dimension_numbers = #tpu.dot_dimension_numbers<[1], [0], [0], [1], [0, 0, 1, 1], [], []>} : vector<8x8xbf16>, vector<8x16xbf16>, vector<8x16xf32> -> vector<8x16xf32>
    %410 = arith.truncf %409 : vector<8x16xf32> to vector<8x16xbf16>
    %c1_246 = arith.constant 1 : index
    %c1_247 = arith.constant 1 : index
    %c0_248 = arith.constant 0 : index
    %c0_249 = arith.constant 0 : index
    %411 = vector.load %arg10[%c1_246, %c1_247, %c0_248, %c0_249] : memref<2x2x16x32xbf16, #tpu.memory_space<vmem>>, vector<1x1x16x32xbf16>
    %412 = vector.shape_cast %411 : vector<1x1x16x32xbf16> to vector<16x32xbf16>
    %cst_250 = arith.constant dense<0.000000e+00> : vector<8x32xf32>
    %413 = tpu.matmul %410, %412, %cst_250 {dimension_numbers = #tpu.dot_dimension_numbers<[1], [0], [0], [1], [0, 0, 1, 1], [], []>} : vector<8x16xbf16>, vector<16x32xbf16>, vector<8x32xf32> -> vector<8x32xf32>
    %414 = arith.addf %389, %413 : vector<8x32xf32>
    %415 = tpu.concatenate %363, %414 in 0 : vector<8x32xf32>, vector<8x32xf32> -> vector<16x32xf32>
    %c1_251 = arith.constant 1 : index
    %c0_252 = arith.constant 0 : index
    %c0_253 = arith.constant 0 : index
    %416 = vector.load %arg11[%c1_251, %c0_252, %c0_253] : memref<2x1x32xf32, #tpu.memory_space<vmem>>, vector<1x1x32xf32>
    %417 = vector.shape_cast %416 : vector<1x1x32xf32> to vector<1x32xf32>
    %418 = vector.broadcast %417 : vector<1x32xf32> to vector<16x32xf32>
    %419 = arith.addf %415, %418 : vector<16x32xf32>
    %420 = arith.addf %419, %263 : vector<16x32xf32>
    %c1_254 = arith.constant 1 : index
    %c0_255 = arith.constant 0 : index
    %c0_256 = arith.constant 0 : index
    %421 = vector.load %arg12[%c1_254, %c0_255, %c0_256] : memref<2x1x32xf32, #tpu.memory_space<vmem>>, vector<1x1x32xf32>
    %422 = vector.shape_cast %421 : vector<1x1x32xf32> to vector<1x32xf32>
    %c1_257 = arith.constant 1 : index
    %c0_258 = arith.constant 0 : index
    %c0_259 = arith.constant 0 : index
    %423 = vector.load %arg13[%c1_257, %c0_258, %c0_259] : memref<2x1x32xf32, #tpu.memory_space<vmem>>, vector<1x1x32xf32>
    %424 = vector.shape_cast %423 : vector<1x1x32xf32> to vector<1x32xf32>
    %cst_260 = arith.constant dense<0.000000e+00> : vector<16xf32>
    %425 = vector.multi_reduction <add>, %420, %cst_260 [1] : vector<16x32xf32> to vector<16xf32>
    %426 = vector.shape_cast %425 : vector<16xf32> to vector<16x1xf32>
    %cst_261 = arith.constant 3.200000e+01 : f32
    %427 = vector.broadcast %cst_261 : f32 to vector<16x1xf32>
    %428 = arith.divf %426, %427 : vector<16x1xf32>
    %429 = vector.broadcast %428 : vector<16x1xf32> to vector<16x32xf32>
    %430 = arith.subf %420, %429 : vector<16x32xf32>
    %431 = arith.mulf %430, %430 : vector<16x32xf32>
    %cst_262 = arith.constant dense<0.000000e+00> : vector<16xf32>
    %432 = vector.multi_reduction <add>, %431, %cst_262 [1] : vector<16x32xf32> to vector<16xf32>
    %433 = vector.shape_cast %432 : vector<16xf32> to vector<16x1xf32>
    %cst_263 = arith.constant 3.200000e+01 : f32
    %434 = vector.broadcast %cst_263 : f32 to vector<16x1xf32>
    %435 = arith.divf %433, %434 : vector<16x1xf32>
    %436 = vector.broadcast %428 : vector<16x1xf32> to vector<16x32xf32>
    %437 = arith.subf %420, %436 : vector<16x32xf32>
    %cst_264 = arith.constant 9.99999996E-13 : f32
    %438 = vector.broadcast %cst_264 : f32 to vector<16x1xf32>
    %439 = arith.addf %435, %438 : vector<16x1xf32>
    %440 = math.rsqrt %439 : vector<16x1xf32>
    %441 = vector.broadcast %440 : vector<16x1xf32> to vector<16x32xf32>
    %442 = arith.mulf %437, %441 : vector<16x32xf32>
    %443 = vector.broadcast %422 : vector<1x32xf32> to vector<16x32xf32>
    %444 = arith.mulf %442, %443 : vector<16x32xf32>
    %445 = vector.broadcast %424 : vector<1x32xf32> to vector<16x32xf32>
    %446 = arith.addf %444, %445 : vector<16x32xf32>
    %447 = arith.truncf %446 : vector<16x32xf32> to vector<16x32xbf16>
    %c1_265 = arith.constant 1 : index
    %c0_266 = arith.constant 0 : index
    %c0_267 = arith.constant 0 : index
    %448 = vector.load %arg14[%c1_265, %c0_266, %c0_267] : memref<2x32x64xbf16, #tpu.memory_space<vmem>>, vector<1x32x64xbf16>
    %449 = vector.shape_cast %448 : vector<1x32x64xbf16> to vector<32x64xbf16>
    %cst_268 = arith.constant dense<0.000000e+00> : vector<16x64xf32>
    %450 = tpu.matmul %447, %449, %cst_268 {dimension_numbers = #tpu.dot_dimension_numbers<[1], [0], [0], [1], [0, 0, 1, 1], [], []>} : vector<16x32xbf16>, vector<32x64xbf16>, vector<16x64xf32> -> vector<16x64xf32>
    %c1_269 = arith.constant 1 : index
    %c0_270 = arith.constant 0 : index
    %c0_271 = arith.constant 0 : index
    %451 = vector.load %arg15[%c1_269, %c0_270, %c0_271] : memref<2x1x64xf32, #tpu.memory_space<vmem>>, vector<1x1x64xf32>
    %452 = vector.shape_cast %451 : vector<1x1x64xf32> to vector<1x64xf32>
    %453 = vector.broadcast %452 : vector<1x64xf32> to vector<16x64xf32>
    %454 = arith.addf %450, %453 : vector<16x64xf32>
    %455 = arith.mulf %454, %454 : vector<16x64xf32>
    %456 = arith.mulf %454, %455 : vector<16x64xf32>
    %cst_272 = arith.constant 4.471500e-02 : f32
    %457 = vector.broadcast %cst_272 : f32 to vector<16x64xf32>
    %458 = arith.mulf %457, %456 : vector<16x64xf32>
    %459 = arith.addf %454, %458 : vector<16x64xf32>
    %cst_273 = arith.constant 0.797884583 : f32
    %460 = vector.broadcast %cst_273 : f32 to vector<16x64xf32>
    %461 = arith.mulf %460, %459 : vector<16x64xf32>
    %462 = math.tanh %461 : vector<16x64xf32>
    %cst_274 = arith.constant 1.000000e+00 : f32
    %463 = vector.broadcast %cst_274 : f32 to vector<16x64xf32>
    %464 = arith.addf %463, %462 : vector<16x64xf32>
    %cst_275 = arith.constant 5.000000e-01 : f32
    %465 = vector.broadcast %cst_275 : f32 to vector<16x64xf32>
    %466 = arith.mulf %465, %464 : vector<16x64xf32>
    %467 = arith.mulf %454, %466 : vector<16x64xf32>
    %468 = arith.truncf %467 : vector<16x64xf32> to vector<16x64xbf16>
    %c1_276 = arith.constant 1 : index
    %c0_277 = arith.constant 0 : index
    %c0_278 = arith.constant 0 : index
    %469 = vector.load %arg16[%c1_276, %c0_277, %c0_278] : memref<2x64x32xbf16, #tpu.memory_space<vmem>>, vector<1x64x32xbf16>
    %470 = vector.shape_cast %469 : vector<1x64x32xbf16> to vector<64x32xbf16>
    %cst_279 = arith.constant dense<0.000000e+00> : vector<16x32xf32>
    %471 = tpu.matmul %468, %470, %cst_279 {dimension_numbers = #tpu.dot_dimension_numbers<[1], [0], [0], [1], [0, 0, 1, 1], [], []>} : vector<16x64xbf16>, vector<64x32xbf16>, vector<16x32xf32> -> vector<16x32xf32>
    %c1_280 = arith.constant 1 : index
    %c0_281 = arith.constant 0 : index
    %c0_282 = arith.constant 0 : index
    %472 = vector.load %arg17[%c1_280, %c0_281, %c0_282] : memref<2x1x32xf32, #tpu.memory_space<vmem>>, vector<1x1x32xf32>
    %473 = vector.shape_cast %472 : vector<1x1x32xf32> to vector<1x32xf32>
    %474 = vector.broadcast %473 : vector<1x32xf32> to vector<16x32xf32>
    %475 = arith.addf %471, %474 : vector<16x32xf32>
    %476 = arith.addf %475, %446 : vector<16x32xf32>
    %c1_283 = arith.constant 1 : index
    %c0_284 = arith.constant 0 : index
    %c0_285 = arith.constant 0 : index
    %477 = vector.load %arg18[%c1_283, %c0_284, %c0_285] : memref<2x1x32xf32, #tpu.memory_space<vmem>>, vector<1x1x32xf32>
    %478 = vector.shape_cast %477 : vector<1x1x32xf32> to vector<1x32xf32>
    %c1_286 = arith.constant 1 : index
    %c0_287 = arith.constant 0 : index
    %c0_288 = arith.constant 0 : index
    %479 = vector.load %arg19[%c1_286, %c0_287, %c0_288] : memref<2x1x32xf32, #tpu.memory_space<vmem>>, vector<1x1x32xf32>
    %480 = vector.shape_cast %479 : vector<1x1x32xf32> to vector<1x32xf32>
    %cst_289 = arith.constant dense<0.000000e+00> : vector<16xf32>
    %481 = vector.multi_reduction <add>, %476, %cst_289 [1] : vector<16x32xf32> to vector<16xf32>
    %482 = vector.shape_cast %481 : vector<16xf32> to vector<16x1xf32>
    %cst_290 = arith.constant 3.200000e+01 : f32
    %483 = vector.broadcast %cst_290 : f32 to vector<16x1xf32>
    %484 = arith.divf %482, %483 : vector<16x1xf32>
    %485 = vector.broadcast %484 : vector<16x1xf32> to vector<16x32xf32>
    %486 = arith.subf %476, %485 : vector<16x32xf32>
    %487 = arith.mulf %486, %486 : vector<16x32xf32>
    %cst_291 = arith.constant dense<0.000000e+00> : vector<16xf32>
    %488 = vector.multi_reduction <add>, %487, %cst_291 [1] : vector<16x32xf32> to vector<16xf32>
    %489 = vector.shape_cast %488 : vector<16xf32> to vector<16x1xf32>
    %cst_292 = arith.constant 3.200000e+01 : f32
    %490 = vector.broadcast %cst_292 : f32 to vector<16x1xf32>
    %491 = arith.divf %489, %490 : vector<16x1xf32>
    %492 = vector.broadcast %484 : vector<16x1xf32> to vector<16x32xf32>
    %493 = arith.subf %476, %492 : vector<16x32xf32>
    %cst_293 = arith.constant 9.99999996E-13 : f32
    %494 = vector.broadcast %cst_293 : f32 to vector<16x1xf32>
    %495 = arith.addf %491, %494 : vector<16x1xf32>
    %496 = math.rsqrt %495 : vector<16x1xf32>
    %497 = vector.broadcast %496 : vector<16x1xf32> to vector<16x32xf32>
    %498 = arith.mulf %493, %497 : vector<16x32xf32>
    %499 = vector.broadcast %478 : vector<1x32xf32> to vector<16x32xf32>
    %500 = arith.mulf %498, %499 : vector<16x32xf32>
    %501 = vector.broadcast %480 : vector<1x32xf32> to vector<16x32xf32>
    %502 = arith.addf %500, %501 : vector<16x32xf32>
    %503 = vector.extract_strided_slice %502 {offsets = [0, 0], sizes = [1, 32], strides = [1, 1]} : vector<16x32xf32> to vector<1x32xf32>
    %504 = vector.extract_strided_slice %502 {offsets = [8, 0], sizes = [1, 32], strides = [1, 1]} : vector<16x32xf32> to vector<1x32xf32>
    %505 = tpu.concatenate %503, %504 in 0 : vector<1x32xf32>, vector<1x32xf32> -> vector<2x32xf32>
    %506 = arith.truncf %505 : vector<2x32xf32> to vector<2x32xbf16>
    %c0_294 = arith.constant 0 : index
    %c0_295 = arith.constant 0 : index
    %507 = vector.load %arg20[%c0_294, %c0_295] : memref<32x32xbf16, #tpu.memory_space<vmem>>, vector<32x32xbf16>
    %cst_296 = arith.constant dense<0.000000e+00> : vector<2x32xf32>
    %508 = tpu.matmul %506, %507, %cst_296 {dimension_numbers = #tpu.dot_dimension_numbers<[1], [0], [0], [1], [0, 0, 1, 1], [], []>} : vector<2x32xbf16>, vector<32x32xbf16>, vector<2x32xf32> -> vector<2x32xf32>
    %c0_297 = arith.constant 0 : index
    %c0_298 = arith.constant 0 : index
    %509 = vector.load %arg21[%c0_297, %c0_298] : memref<1x32xf32, #tpu.memory_space<vmem>>, vector<1x32xf32>
    %510 = vector.broadcast %509 : vector<1x32xf32> to vector<2x32xf32>
    %511 = arith.addf %508, %510 : vector<2x32xf32>
    %512 = math.tanh %511 : vector<2x32xf32>
    %513 = arith.truncf %512 : vector<2x32xf32> to vector<2x32xbf16>
    %c0_299 = arith.constant 0 : index
    %c0_300 = arith.constant 0 : index
    %514 = vector.load %arg22[%c0_299, %c0_300] : memref<32x2xbf16, #tpu.memory_space<vmem>>, vector<32x2xbf16>
    %cst_301 = arith.constant dense<0.000000e+00> : vector<2x2xf32>
    %515 = tpu.matmul %513, %514, %cst_301 {dimension_numbers = #tpu.dot_dimension_numbers<[1], [0], [0], [1], [0, 0, 1, 1], [], []>} : vector<2x32xbf16>, vector<32x2xbf16>, vector<2x2xf32> -> vector<2x2xf32>
    %c0_302 = arith.constant 0 : index
    %c0_303 = arith.constant 0 : index
    %516 = vector.load %arg23[%c0_302, %c0_303] : memref<1x2xf32, #tpu.memory_space<vmem>>, vector<1x2xf32>
    %517 = vector.broadcast %516 : vector<1x2xf32> to vector<2x2xf32>
    %518 = arith.addf %515, %517 : vector<2x2xf32>
    %c0_304 = arith.constant 0 : index
    %c0_305 = arith.constant 0 : index
    %519 = vector.load %arg24[%c0_304, %c0_305] : memref<2x2xf32, #tpu.memory_space<vmem>>, vector<2x2xf32>
    tpu.vector_store %arg24[%c0_304, %c0_305], %518 {strides = array<i32>} : memref<2x2xf32, #tpu.memory_space<vmem>>, vector<2x2xf32>,
    return
  }
}

</mosaic_0001>

<bundles_post_ra>
// kernel: bert_classifier_forward.1
= control target key start
LH: loop header
LB: loop body
LE: loop exit
PB: predicated region body
PF: predicated region fallthrough
CT: control target
= control target key end

     0   :  { %s4352_s0 = inlined_call_operand.vmem [shape: f32[16,32], index: 0, kind: input, shape index: {}]   ;;  %s4353_s1 = inlined_call_operand.vmem [shape: f32[2,1,8], index: 1, kind: input, shape index: {}]   ;;  %s4354_s2 = inlined_call_operand.vmem [shape: f32[1,32], index: 2, kind: input, shape index: {}]   ;;  %s4355_s3 = inlined_call_operand.vmem [shape: f32[1,32], index: 3, kind: input, shape index: {}]   ;;  %s4356_s4 = inlined_call_operand.vmem [shape: bf16[2,2,32,16], index: 4, kind: input, shape index: {}]   ;;  %s4357_s5 = inlined_call_operand.vmem [shape: f32[2,2,1,16], index: 5, kind: input, shape index: {}]   ;;  %s4358_s6 = inlined_call_operand.vmem [shape: bf16[2,2,32,16], index: 6, kind: input, shape index: {}]   ;;  %s4359_s7 = inlined_call_operand.vmem [shape: f32[2,2,1,16], index: 7, kind: input, shape index: {}]   ;;  %s4360_s8 = inlined_call_operand.vmem [shape: bf16[2,2,32,16], index: 8, kind: input, shape index: {}]   ;;  %s4361_s9 = inlined_call_operand.vmem [shape: f32[2,2,1,16], index: 9, kind: input, shape index: {}]   ;;  %s4362_s10 = inlined_call_operand.vmem [shape: bf16[2,2,16,32], index: 10, kind: input, shape index: {}]   ;;  %s4363_s11 = inlined_call_operand.vmem [shape: f32[2,1,32], index: 11, kind: input, shape index: {}]   ;;  %s4364_s12 = inlined_call_operand.vmem [shape: f32[2,1,32], index: 12, kind: input, shape index: {}]   ;;  %s4365_s13 = inlined_call_operand.vmem [shape: f32[2,1,32], index: 13, kind: input, shape index: {}]   ;;  %s4366_s14 = inlined_call_operand.vmem [shape: bf16[2,32,64], index: 14, kind: input, shape index: {}]   ;;  %s4367_s15 = inlined_call_operand.vmem [shape: f32[2,1,64], index: 15, kind: input, shape index: {}]   ;;  %s4368_s16 = inlined_call_operand.vmem [shape: bf16[2,64,32], index: 16, kind: input, shape index: {}]   ;;  %s4369_s17 = inlined_call_operand.vmem [shape: f32[2,1,32], index: 17, kind: input, shape index: {}]   ;;  %s4370_s18 = inlined_call_operand.vmem [shape: f32[2,1,32], index: 18, kind: input, shape index: {}]   ;;  %s4371_s19 = inlined_call_operand.vmem [shape: f32[2,1,32], index: 19, kind: input, shape index: {}]   ;;  %s4372_s20 = inlined_call_operand.vmem [shape: bf16[32,32], index: 20, kind: input, shape index: {}]   ;;  %s4373_s21 = inlined_call_operand.vmem [shape: f32[1,32], index: 21, kind: input, shape index: {}]   ;;  %s4374_s22 = inlined_call_operand.vmem [shape: bf16[32,2], index: 22, kind: input, shape index: {}]   ;;  %s4375_s23 = inlined_call_operand.vmem [shape: f32[1,2], index: 23, kind: input, shape index: {}]   ;;  %s4376_s24 = inlined_call_operand.hbm [shape: f32[2,2], index: 24, kind: output, shape index: {}]  }
   0x1   :  { %4384 = sst [smem:[#allocation5_spill]] %s4352_s0 }
   0x2   :  { %4385 = sst [smem:[#allocation6_spill]] %s4353_s1 }
   0x3   :  { %4386 = sst [smem:[#allocation7_spill]] %s4354_s2 }
   0x4   :  { %4387 = sst [smem:[#allocation8_spill]] %s4355_s3 }
   0x5   :  { %4388 = sst [smem:[#allocation9_spill]] %s4356_s4 }
   0x6   :  { %4389 = sst [smem:[#allocation10_spill]] %s4357_s5 }
   0x7   :  { %4390 = sst [smem:[#allocation11_spill]] %s4358_s6 }
   0x8   :  { %4391 = sst [smem:[#allocation12_spill]] %s4359_s7 }
   0x9   :  { %4392 = sst [smem:[#allocation13_spill]] %s4360_s8 }
   0xa   :  { %s4393_s27 = sld [smem:[#allocation5_spill]]  ;;  %vm83_vm0 = vcmask 261120  }
  0x10   :  { %v79_v0 = vld [vmem:[%s4393_s27] sm:$0xff]  ;;  %v80_v1 = vld [vmem:[%s4393_s27 + $0x8] sm:$0xff] }
  0x11   :  { %v84_v2 = vsel %vm83_vm0, %v79_v0, 0.0  ;;  %v87_v3 = vsel %vm83_vm0, %v80_v1, 0.0 }
  0x12   :  { %85 = vadd.xlane.f32.xlu0 %v84_v2 }
  0x16   :  { %88 = vadd.xlane.f32.xlu0 %v87_v3 }
  0x17   :  { %29 = vsyncpa [#allocation3], 0  ;;  %s4394_s0 = sld [smem:[#allocation9_spill]]  ;;  %s4395_s3 = sld [smem:[#allocation11_spill]]  ;;  %v3642_v16 = vmov 0.0   ;;  %vm3643_vm1 = vmmov 0  }
  0x18   :  { %3213 = vmatprep.subr.bf16.mxu0 %v3642_v16  ;;  %3221 = vmatprep.subr.bf16.mxu1 %v3642_v16  ;;  %s4396_s27 = sld [smem:[#allocation7_spill]]  ;;  %s4397_s2 = sld [smem:[#allocation8_spill]]  ;;  %vm528_vm2 = vcmask 130048   ;;  %v2928_v61 = vld [vmem:[%s4361_s9] ss:$0 sm:$0xff]  ;;  %vm599_vm3 = vcmask 1043456  }
  0x19   :  { %3217 = vmatprep.mubr.msk.bf16.mxu0 %vm3643_vm1, %v3642_v16  ;;  %3225 = vmatprep.mubr.msk.bf16.mxu1 %vm3643_vm1, %v3642_v16  ;;  %s4398_s30 = sld [smem:[#allocation13_spill]]  ;;  %s4399_s5 = sld [smem:[#allocation10_spill]]  ;;  %vm583_vm4 = vcmask 64512   ;;  %vm1355_vm5 = vcmask 523264   ;;  %vm2765_vm6 = vcmask 1040384   ;;  %vm2902_vm7 = vcmask 9216  }
  0x1a   :  { %s4400_s28 = sld [smem:[#allocation12_spill]]  ;;  %s4401_s6 = sld [smem:[#allocation6_spill]] }
  0x1d   :  { %v3512_v14 = vld [vmem:[%s4394_s0] sm:$0xff]   ;;  %v3514_v17 = vld [vmem:[%s4394_s0 + $0x8] sm:$0xff]   ;;  %v3517_v36 = vld [vmem:[%s4394_s0 + $0x10] sm:$0xff]  }
  0x1e   :  { %v3513_v15 = vld [vmem:[%s4395_s3] sm:$0xff]   ;;  %3214 = vmatpush3.bf16.msra.mxu0 %v3512_v14  ;;  %v3515_v18 = vld [vmem:[%s4395_s3 + $0x8] sm:$0xff]   ;;  %v3519_v39 = vld [vmem:[%s4394_s0 + $0x18] sm:$0xff]  }
  0x1f   :  { %3222 = vmatpush3.bf16.msra.mxu1 %v3513_v15  ;;  %3215 = vmatprep.subr.bf16.mxu0 %v3642_v16  ;;  %v2918_v27 = vld [vmem:[%s4396_s27] ss:$0 sm:$0xff]  ;;  %v3518_v38 = vld [vmem:[%s4398_s30 + $0x8] sm:$0xff]   ;;  %v3520_v40 = vld [vmem:[%s4395_s3 + $0x10] sm:$0xff]  }
  0x20   :  { %3223 = vmatprep.subr.bf16.mxu1 %v3642_v16  ;;  %v2919_v31 = vld [vmem:[%s4397_s2] ss:$0 sm:$0xff]  ;;  %v3521_v41 = vld [vmem:[%s4398_s30 + $0x10] sm:$0xff]   ;;  %v3522_v42 = vld [vmem:[%s4395_s3 + $0x18] sm:$0xff]  }
  0x21   :  { %v3516_v35 = vld [vmem:[%s4398_s30] sm:$0xff]   ;;  %v3523_v43 = vld [vmem:[%s4398_s30 + $0x18] sm:$0xff]  }
  0x22   :  { %3216 = vmatpush3.bf16.msra.mxu0 %v3514_v17  ;;  %v2920_v44 = vld [vmem:[%s4399_s5] ss:$0 sm:$0xff]  ;;  %v2937_v63 = vld [vmem:[%s4399_s5 + $0x1] ss:$0 sm:$0xff] }
  0x23   :  { %3224 = vmatpush3.bf16.msra.mxu1 %v3515_v18  ;;  %3229 = vmatprep.subr.bf16.mxu0 %v3642_v16  ;;  %v2924_v46 = vld [vmem:[%s4400_s28] ss:$0 sm:$0xff]  ;;  %v2946_v14 = vld [vmem:[%s4400_s28 + $0x1] ss:$0 sm:$0xff] }
  0x24   :  { %3237 = vmatprep.subr.bf16.mxu1 %v3642_v16  ;;  %v2955_v17 = vld [vmem:[%s4361_s9 + $0x1] ss:$0 sm:$0xff] }
  0x9f   :  { %v86_v4 = vpop.xlane.xlu0 %85 }
  0xa0   :  { %v91_v5 = vmul.f32 0.03125, %v86_v4 }
  0xa2   :  { %v93_v6 = vsub.f32 %v79_v0, %v91_v5 }
  0xa3   :  { %v89_v7 = vpop.xlane.xlu0 %88 }
  0xa4   :  { %v92_v8 = vmul.f32 0.03125, %v89_v7  ;;  %v95_v9 = vmul.f32 %v93_v6, %v93_v6 }
  0xa6   :  { %v94_v10 = vsub.f32 %v80_v1, %v92_v8  ;;  %v97_v11 = vsel %vm83_vm0, %v95_v9, 0.0 }
  0xa7   :  { %98 = vadd.xlane.f32.xlu1 %v97_v11 }
  0xa8   :  { %v96_v12 = vmul.f32 %v94_v10, %v94_v10 }
  0xaa   :  { %v100_v13 = vsel %vm83_vm0, %v96_v12, 0.0 }
  0xab   :  { %101 = vadd.xlane.f32.xlu1 %v100_v13 }
 0x134   :  { %v99_v19 = vpop.xlane.xlu1 %98 }
 0x135   :  { %v103_v20 = vmul.f32 0.03125, %v99_v19 }
 0x137   :  { %v105_v21 = vadd.f32 1e-12, %v103_v20 }
 0x138   :  { %v102_v22 = vpop.xlane.xlu1 %101 }
 0x139   :  { %3556 = vrsqrt.f32 %v105_v21  ;;  %v104_v23 = vmul.f32 0.03125, %v102_v22 }
 0x13b   :  { %v106_v24 = vadd.f32 1e-12, %v104_v23 }
 0x13d   :  { %3558 = vrsqrt.f32 %v106_v24 }
 0x143   :  { %v3557_v25 = vpop.eup %3556 }
 0x144   :  { %v109_v26 = vmul.f32 %v3557_v25, %v93_v6 }
 0x146   :  { %v117_v29 = vmul.f32 %v2918_v27, %v109_v26 }
 0x147   :  { %v3559_v28 = vpop.eup %3558 }
 0x148   :  { %v110_v30 = vmul.f32 %v3559_v28, %v94_v10  ;;  %v3808_v33 = vadd.f32 %v2919_v31, %v117_v29 }
 0x14a   :  { %v118_v32 = vmul.f32 %v2918_v27, %v110_v30 }
 0x14c   :  { %v3810_v34 = vadd.f32 %v2919_v31, %v118_v32 }
 0x14e   :  { %v127_v37 = vpack.c.bf16 %v3810_v34, %v3808_v33 }
 0x150   :  { %3218 = vmatmul.mubr.msk.bf16.vlgmr.msra.gmra.mrb[0].mxu0 %vm83_vm0, %v127_v37  ;;  %3226 = vmatmul.mubr.msk.bf16.vlgmr.msra.gmra.mrb[0].mxu1 %vm83_vm0, %v127_v37 }
 0x151   :  { %3230 = vmatpush3.bf16.msra.mxu0 %v3516_v35  ;;  %3238 = vmatpush3.bf16.msra.mxu1 %v3517_v36  ;;  %v3914_v35 = vld [vmem:[%s4401_s6] ss:$0 sm:$0xff] }
 0x152   :  { %3231 = vmatprep.subr.bf16.mxu0 %v3642_v16  ;;  %3239 = vmatprep.subr.bf16.mxu1 %v3642_v16 }
 0x153   :  { %3233 = vmatprep.mubr.msk.bf16.mxu0 %vm3643_vm1, %v3642_v16  ;;  %3241 = vmatprep.mubr.msk.bf16.mxu1 %vm3643_vm1, %v3642_v16 }
 0x155   :  { %3232 = vmatpush3.bf16.msra.mxu0 %v3518_v38  ;;  %3240 = vmatpush3.bf16.msra.mxu1 %v3519_v39 }
 0x156   :  { %3245 = vmatprep.subr.bf16.mxu0 %v3642_v16  ;;  %3253 = vmatprep.subr.bf16.mxu1 %v3642_v16 }
 0x158   :  { %3234 = vmatmul.mubr.msk.bf16.vlgmr.msra.gmra.mrb[4].mxu0 %vm83_vm0, %v127_v37  ;;  %3242 = vmatmul.mubr.msk.bf16.vlgmr.msra.gmra.mrb[4].mxu1 %vm83_vm0, %v127_v37 }
 0x159   :  { %3246 = vmatpush3.bf16.msra.mxu0 %v3520_v40  ;;  %3254 = vmatpush3.bf16.msra.mxu1 %v3521_v41 }
 0x15a   :  { %3247 = vmatprep.subr.bf16.mxu0 %v3642_v16  ;;  %3255 = vmatprep.subr.bf16.mxu1 %v3642_v16 }
 0x15b   :  { %3249 = vmatprep.mubr.msk.bf16.mxu0 %vm3643_vm1, %v3642_v16  ;;  %3257 = vmatprep.mubr.msk.bf16.mxu1 %vm3643_vm1, %v3642_v16 }
 0x15d   :  { %3248 = vmatpush3.bf16.msra.mxu0 %v3522_v42  ;;  %3256 = vmatpush3.bf16.msra.mxu1 %v3523_v43 }
 0x15e   :  { %3261 = vmatprep.subr.bf16.mxu0 %v3642_v16  ;;  %3267 = vmatprep.subr.bf16.mxu1 %v3642_v16 }
 0x160   :  { %3250 = vmatmul.mubr.msk.bf16.vlgmr.msra.gmra.mrb[8].mxu0 %vm83_vm0, %v127_v37  ;;  %3258 = vmatmul.mubr.msk.bf16.vlgmr.msra.gmra.mrb[8].mxu1 %vm83_vm0, %v127_v37 }
 0x161   :  { %3263 = vmatprep.mubr.msk.bf16.mxu0 %vm3643_vm1, %v3642_v16  ;;  %3269 = vmatprep.mubr.msk.bf16.mxu1 %vm3643_vm1, %v3642_v16 }
 0x223   :  { %v188_v45 = vpop.f32.mrb[0].mxu0  ;;  %v253_v47 = vpop.f32.mrb[0].mxu1 }
 0x224   :  { %v3219_v48 = vpop.f32.mrb[1].mxu0  ;;  %v3227_v49 = vpop.f32.mrb[1].mxu1  ;;  %v189_v52 = vadd.f32 %v2920_v44, %v188_v45  ;;  %v254_v53 = vadd.f32 %v2924_v46, %v253_v47 }
 0x225   :  { %v191_v50 = vpop.f32.mrb[2].mxu0  ;;  %v256_v51 = vpop.f32.mrb[2].mxu1 }
 0x226   :  { %v192_v54 = vadd.f32 %v2920_v44, %v191_v50  ;;  %v257_v55 = vadd.f32 %v2924_v46, %v256_v51  ;;  %v3220_v56 = vpop.f32.mrb[3].mxu0  ;;  %v3228_v57 = vpop.f32.mrb[3].mxu1 }
 0x228   :  { %v3870_v58 = vpack.c.bf16 %v192_v54, %v189_v52  ;;  %v3872_v59 = vpack.c.bf16 %v257_v55, %v254_v53 }
 0x22a   :  { %v533_v60 = vsel %vm528_vm2, %v3872_v59, 0 }
 0x22b   :  { %v318_v62 = vpop.f32.mrb[4].mxu0  ;;  %v385_v0 = vpop.f32.mrb[4].mxu1  ;;  %3262 = vmatpush3.bf16.xpose.msra.mxu0 %v533_v60 }
 0x22c   :  { %v3235_v1 = vpop.f32.mrb[5].mxu0  ;;  %v3243_v2 = vpop.f32.mrb[5].mxu1  ;;  %3273 = vmatprep.subr.bf16.mxu0 %v3642_v16  ;;  %v319_v5 = vadd.f32 %v2928_v61, %v318_v62  ;;  %v386_v6 = vadd.f32 %v2937_v63, %v385_v0 }
 0x22d   :  { %v321_v3 = vpop.f32.mrb[6].mxu0  ;;  %v388_v4 = vpop.f32.mrb[6].mxu1 }
 0x22e   :  { %v322_v7 = vadd.f32 %v2928_v61, %v321_v3  ;;  %v389_v8 = vadd.f32 %v2937_v63, %v388_v4  ;;  %v3236_v9 = vpop.f32.mrb[7].mxu0  ;;  %v3244_v10 = vpop.f32.mrb[7].mxu1 }
 0x230   :  { %v3883_v11 = vpack.c.bf16 %v322_v7, %v319_v5  ;;  %v3885_v12 = vpack.c.bf16 %v389_v8, %v386_v6  ;;  %v3931_v5 = vld [vmem:[%s4362_s10] sm:$0xff]   ;;  %v3525_v7 = vld [vmem:[%s4362_s10 + $0x8] sm:$0xff]  }
 0x232   :  { %3264 = vmatmul.mubr.msk.bf16.vlgmr.msra.gmra.mrb[12].mxu0 %vm528_vm2, %v3870_v58  ;;  %v601_v13 = vsel %vm599_vm3, %v3883_v11, 0  ;;  %v927_v8 = vrot.slane %v3883_v11, 4 }
 0x233   :  { %v452_v15 = vpop.f32.mrb[8].mxu0  ;;  %v519_v18 = vpop.f32.mrb[8].mxu1  ;;  %3268 = vmatpush3.bf16.msra.mxu1 %v601_v13  ;;  %3275 = vmatprep.mubr.msk.bf16.mxu0 %vm3643_vm1, %v3642_v16 }
 0x234   :  { %v3251_v19 = vpop.f32.mrb[9].mxu0  ;;  %v3259_v20 = vpop.f32.mrb[9].mxu1  ;;  %3279 = vmatprep.subr.bf16.mxu1 %v3642_v16  ;;  %v453_v23 = vadd.f32 %v2946_v14, %v452_v15  ;;  %v520_v24 = vadd.f32 %v2955_v17, %v519_v18  ;;  %v859_v18 = vrot.slane %v3872_v59, 4 }
 0x235   :  { %v455_v21 = vpop.f32.mrb[10].mxu0  ;;  %v522_v22 = vpop.f32.mrb[10].mxu1 }
 0x236   :  { %v456_v25 = vadd.f32 %v2946_v14, %v455_v21  ;;  %v523_v26 = vadd.f32 %v2955_v17, %v522_v22  ;;  %v3252_v27 = vpop.f32.mrb[11].mxu0  ;;  %v3260_v28 = vpop.f32.mrb[11].mxu1  ;;  %v932_v17 = vsel %vm599_vm3, %v927_v8, 0 }
 0x238   :  { %v3900_v29 = vpack.c.bf16 %v456_v25, %v453_v23  ;;  %v3902_v30 = vpack.c.bf16 %v523_v26, %v520_v24  ;;  %v864_v23 = vsel %vm528_vm2, %v859_v18, 0  ;;  %v857_v25 = vrot.slane %v3870_v58, 4 }
 0x239   :  { %v976_v26 = vrot.slane %v3885_v12, 4 }
 0x23a   :  { %v650_v31 = vsel %vm528_vm2, %v3900_v29, 0  ;;  %v710_v1 = vsel %vm599_vm3, %v3902_v30, 0  ;;  %v978_v24 = vrot.slane %v3900_v29, 4 }
 0x23b   :  { %3274 = vmatpush3.bf16.xpose.msra.mxu0 %v650_v31 }
 0x23c   :  { %3285 = vmatprep.subr.bf16.mxu0 %v3642_v16  ;;  %v983_v59 = vsel %vm528_vm2, %v978_v24, 0 }
 0x242   :  { %3276 = vmatmul.mubr.msk.bf16.vlgmr.msra.gmra.mrb[16].mxu0 %vm528_vm2, %v3885_v12  ;;  %v3969_v12 = vld [vmem:[%s4401_s6 + $0x1] ss:$0 sm:$0xff] }
 0x243   :  { %3287 = vmatprep.mubr.msk.bf16.mxu0 %vm3643_vm1, %v3642_v16  ;;  %3286 = vmatpush3.bf16.msra.mxu0 %v3525_v7 }
 0x244   :  { %3297 = vmatprep.subr.bf16.mxu0 %v3642_v16 }
 0x305   :  { %v569_v32 = vpop.f32.mrb[12].mxu0 }
 0x306   :  { %v575_v36 = vmul.f32 0.25, %v569_v32  ;;  %v3265_v37 = vpop.f32.mrb[13].mxu0 }
 0x307   :  { %v572_v38 = vpop.f32.mrb[14].mxu0 }
 0x308   :  { %v3266_v39 = vpop.f32.mrb[15].mxu0  ;;  %v582_v40 = vadd.f32 %v3914_v35, %v575_v36 }
 0x30a   :  { %v584_v41 = vsel %vm583_vm4, %v582_v40, -inf }
 0x30b   :  { %585 = vmax.xlane.f32.xlu0 %v584_v41 }
 0x315   :  { %v686_v42 = vpop.f32.mrb[16].mxu0 }
 0x316   :  { %v692_v43 = vmul.f32 0.25, %v686_v42  ;;  %v3277_v44 = vpop.f32.mrb[17].mxu0 }
 0x317   :  { %v689_v45 = vpop.f32.mrb[18].mxu0 }
 0x318   :  { %v3278_v46 = vpop.f32.mrb[19].mxu0  ;;  %v693_v47 = vadd.f32 %v3914_v35, %v692_v43 }
 0x31a   :  { %v694_v48 = vsel %vm583_vm4, %v693_v47, -inf }
 0x31b   :  { %695 = vmax.xlane.f32.xlu1 %v694_v48 }
 0x398   :  { %v586_v49 = vpop.xlane.xlu0 %585 }
 0x399   :  { %v587_v50 = vsub.f32 %v582_v40, %v586_v49 }
 0x39b   :  { %v588_v51 = vmul.f32 1.442695, %v587_v50 }
 0x39d   :  { %3560 = vpow2.f32 %v588_v51 }
 0x3a7   :  { %v3561_v52 = vpop.eup %3560 }
 0x3a8   :  { %v696_v53 = vpop.xlane.xlu1 %695  ;;  %v590_v54 = vsel %vm583_vm4, %v3561_v52, 0.0 }
 0x3a9   :  { %v697_v55 = vsub.f32 %v693_v47, %v696_v53  ;;  %591 = vadd.xlane.f32.xlu0 %v590_v54 }
 0x3ab   :  { %v698_v56 = vmul.f32 1.442695, %v697_v55 }
 0x3ad   :  { %3562 = vpow2.f32 %v698_v56 }
 0x3b7   :  { %v3563_v57 = vpop.eup %3562 }
 0x3b8   :  { %v700_v60 = vsel %vm583_vm4, %v3563_v57, 0.0 }
 0x3b9   :  { %701 = vadd.xlane.f32.xlu1 %v700_v60 }
 0x436   :  { %v592_v61 = vpop.xlane.xlu0 %591 }
 0x437   :  { %3564 = vrcp.f32 %v592_v61 }
 0x441   :  { %v3565_v62 = vpop.eup %3564 }
 0x442   :  { %v594_v63 = vmul.f32 %v3565_v62, %v3561_v52 }
 0x444   :  { %v595_v0 = vpack.c.bf16 %v594_v63, %v594_v63 }
 0x446   :  { %3270 = vmatmul.mubr.msk.bf16.vlgmr.msra.gmra.mrb[12].mxu1 %vm583_vm4, %v595_v0  ;;  %v702_v2 = vpop.xlane.xlu1 %701 }
 0x447   :  { %3280 = vmatpush3.bf16.msra.mxu1 %v710_v1  ;;  %3566 = vrcp.f32 %v702_v2  ;;  %3281 = vmatprep.mubr.msk.bf16.mxu1 %vm3643_vm1, %v3642_v16 }
 0x448   :  { %3291 = vmatprep.subr.bf16.mxu1 %v3642_v16 }
 0x451   :  { %v3567_v3 = vpop.eup %3566 }
 0x452   :  { %v704_v4 = vmul.f32 %v3567_v3, %v3563_v57  ;;  %v2978_v57 = vld [vmem:[%s4363_s11] ss:$0 sm:$0xff] }
 0x454   :  { %v705_v6 = vpack.c.bf16 %v704_v4, %v704_v4 }
 0x456   :  { %3282 = vmatmul.mubr.msk.bf16.vlgmr.msra.gmra.mrb[16].mxu1 %vm583_vm4, %v705_v6 }
 0x457   :  { %3292 = vmatpush3.bf16.msra.mxu1 %v3931_v5  ;;  %3293 = vmatprep.mubr.msk.bf16.mxu1 %vm3643_vm1, %v3642_v16 }
 0x458   :  { %3303 = vmatprep.subr.bf16.mxu1 %v3642_v16 }
 0x519   :  { %v637_v9 = vpop.f32.mrb[12].mxu1 }
 0x51a   :  { %v643_v10 = vpack.c.bf16 %v637_v9, %v637_v9  ;;  %v3271_v13 = vpop.f32.mrb[13].mxu1 }
 0x51b   :  { %v640_v14 = vpop.f32.mrb[14].mxu1 }
 0x51c   :  { %v3272_v15 = vpop.f32.mrb[15].mxu1  ;;  %3294 = vmatmul.mubr.msk.bf16.vlgmr.msra.gmra.mrb[20].mxu1 %vm528_vm2, %v643_v10 }
 0x51d   :  { %3304 = vmatpush3.bf16.msra.mxu1 %v932_v17  ;;  %3305 = vmatprep.mubr.msk.bf16.mxu1 %vm3643_vm1, %v3642_v16  ;;  %v1040_v15 = vrot.slane %v3902_v30, 4 }
 0x51e   :  { %3315 = vmatprep.subr.bf16.mxu1 %v3642_v16 }
 0x529   :  { %v746_v19 = vpop.f32.mrb[16].mxu1 }
 0x52a   :  { %v752_v20 = vpack.c.bf16 %v746_v19, %v746_v19  ;;  %v3283_v11 = vpop.f32.mrb[17].mxu1  ;;  %v1045_v19 = vsel %vm599_vm3, %v1040_v15, 0 }
 0x52b   :  { %v749_v21 = vpop.f32.mrb[18].mxu1 }
 0x52c   :  { %v3284_v22 = vpop.f32.mrb[19].mxu1  ;;  %3288 = vmatmul.mubr.msk.bf16.vlgmr.msra.gmra.mrb[20].mxu0 %vm528_vm2, %v752_v20 }
 0x52d   :  { %3298 = vmatpush3.bf16.xpose.msra.mxu0 %v864_v23  ;;  %3299 = vmatprep.mubr.msk.bf16.mxu0 %vm3643_vm1, %v3642_v16 }
 0x52e   :  { %3309 = vmatprep.subr.bf16.mxu0 %v3642_v16 }
 0x534   :  { %3300 = vmatmul.mubr.msk.bf16.vlgmr.msra.gmra.mrb[24].mxu0 %vm528_vm2, %v857_v25 }
 0x535   :  { %3310 = vmatpush3.bf16.xpose.msra.mxu0 %v983_v59  ;;  %3311 = vmatprep.mubr.msk.bf16.mxu0 %vm3643_vm1, %v3642_v16 }
 0x536   :  { %3321 = vmatprep.subr.bf16.mxu0 %v3642_v16 }
 0x53c   :  { %3312 = vmatmul.mubr.msk.bf16.vlgmr.msra.gmra.mrb[28].mxu0 %vm528_vm2, %v976_v26 }
 0x53d   :  { %3322 = vmatpush3.bf16.msra.mxu0 %v3525_v7  ;;  %3323 = vmatprep.mubr.msk.bf16.mxu0 %vm3643_vm1, %v3642_v16 }
 0x53e   :  { %3333 = vmatprep.subr.bf16.mxu0 %v3642_v16 }
 0x5ef   :  { %v848_v58 = vpop.f32.mrb[20].mxu1 }
 0x5f0   :  { %v3295_v27 = vpop.f32.mrb[21].mxu1 }
 0x5f1   :  { %v851_v28 = vpop.f32.mrb[22].mxu1 }
 0x5f2   :  { %v3296_v29 = vpop.f32.mrb[23].mxu1 }
 0x5ff   :  { %v799_v31 = vpop.f32.mrb[20].mxu0 }
 0x600   :  { %v849_v32 = vadd.f32 %v848_v58, %v799_v31  ;;  %v3289_v36 = vpop.f32.mrb[21].mxu0 }
 0x601   :  { %v802_v37 = vpop.f32.mrb[22].mxu0 }
 0x602   :  { %v3290_v38 = vpop.f32.mrb[23].mxu0  ;;  %v1181_v62 = vadd.f32 %v2978_v57, %v849_v32 }
 0x604   :  { %v1183_v1 = vadd.f32 %v1181_v62, %v3808_v33 }
 0x606   :  { %v1187_v2 = vsel %vm83_vm0, %v1183_v1, 0.0 }
 0x607   :  { %v900_v39 = vpop.f32.mrb[24].mxu0 }
 0x608   :  { %v906_v40 = vmul.f32 0.25, %v900_v39  ;;  %v3301_v41 = vpop.f32.mrb[25].mxu0 }
 0x609   :  { %v903_v42 = vpop.f32.mrb[26].mxu0 }
 0x60a   :  { %v3302_v43 = vpop.f32.mrb[27].mxu0  ;;  %v913_v44 = vadd.f32 %v3969_v12, %v906_v40 }
 0x60c   :  { %v914_v45 = vsel %vm583_vm4, %v913_v44, -inf }
 0x60d   :  { %915 = vmax.xlane.f32.xlu0 %v914_v45 }
 0x60f   :  { %v1019_v46 = vpop.f32.mrb[28].mxu0 }
 0x610   :  { %v1025_v47 = vmul.f32 0.25, %v1019_v46  ;;  %v3313_v48 = vpop.f32.mrb[29].mxu0 }
 0x611   :  { %v1022_v49 = vpop.f32.mrb[30].mxu0 }
 0x612   :  { %v3314_v50 = vpop.f32.mrb[31].mxu0  ;;  %v1026_v51 = vadd.f32 %v3969_v12, %v1025_v47  ;;  %v3526_v49 = vld [vmem:[%s4366_s14] sm:$0xff]  }
 0x613   :  { %v3527_v50 = vld [vmem:[%s4366_s14 + $0x8] sm:$0xff]  }
 0x614   :  { %v1027_v52 = vsel %vm583_vm4, %v1026_v51, -inf }
 0x615   :  { %1028 = vmax.xlane.f32.xlu1 %v1027_v52 }
 0x69a   :  { %v916_v53 = vpop.xlane.xlu0 %915 }
 0x69b   :  { %v917_v54 = vsub.f32 %v913_v44, %v916_v53 }
 0x69d   :  { %v918_v55 = vmul.f32 1.442695, %v917_v54 }
 0x69f   :  { %3568 = vpow2.f32 %v918_v55 }
 0x6a2   :  { %v1029_v56 = vpop.xlane.xlu1 %1028 }
 0x6a3   :  { %v1030_v60 = vsub.f32 %v1026_v51, %v1029_v56 }
 0x6a5   :  { %v1031_v61 = vmul.f32 1.442695, %v1030_v60  ;;  %v2979_v60 = vld [vmem:[%s4364_s12] ss:$0 sm:$0xff] }
 0x6a7   :  { %3570 = vpow2.f32 %v1031_v61 }
 0x6a9   :  { %v3569_v63 = vpop.eup %3568 }
 0x6aa   :  { %v920_v0 = vsel %vm583_vm4, %v3569_v63, 0.0 }
 0x6ab   :  { %921 = vadd.xlane.f32.xlu0 %v920_v0  ;;  %v2980_v0 = vld [vmem:[%s4365_s13] ss:$0 sm:$0xff] }
 0x6af   :  { %1188 = vadd.xlane.f32.xlu0 %v1187_v2 }
 0x6b1   :  { %v3571_v3 = vpop.eup %3570 }
 0x6b2   :  { %v1033_v4 = vsel %vm583_vm4, %v3571_v3, 0.0 }
 0x6b3   :  { %1034 = vadd.xlane.f32.xlu1 %v1033_v4 }
 0x738   :  { %v922_v6 = vpop.xlane.xlu0 %921 }
 0x739   :  { %3572 = vrcp.f32 %v922_v6  ;;  %v3528_v6 = vld [vmem:[%s4368_s16] sm:$0xff]  }
 0x73c   :  { %v1189_v7 = vpop.xlane.xlu0 %1188 }
 0x73d   :  { %v1193_v8 = vmul.f32 0.03125, %v1189_v7  ;;  %v3529_v7 = vld [vmem:[%s4368_s16 + $0x8] sm:$0xff]  }
 0x73f   :  { %v3982_v9 = vsub.f32 %v1183_v1, %v1193_v8  ;;  %v3530_v8 = vld [vmem:[%s4368_s16 + $0x10] sm:$0xff]  }
 0x740   :  { %v1035_v10 = vpop.xlane.xlu1 %1034 }
 0x741   :  { %3574 = vrcp.f32 %v1035_v10  ;;  %v1197_v13 = vmul.f32 %v3982_v9, %v3982_v9  ;;  %v2981_v10 = vld [vmem:[%s4367_s15] ss:$0 sm:$0xff] }
 0x743   :  { %v3573_v33 = vpop.eup %3572  ;;  %v1199_v14 = vsel %vm83_vm0, %v1197_v13, 0.0 }
 0x744   :  { %v924_v17 = vmul.f32 %v3573_v33, %v3569_v63  ;;  %1200 = vadd.xlane.f32.xlu0 %v1199_v14 }
 0x746   :  { %v925_v18 = vpack.c.bf16 %v924_v17, %v924_v17 }
 0x748   :  { %3306 = vmatmul.mubr.msk.bf16.vlgmr.msra.gmra.mrb[24].mxu1 %vm583_vm4, %v925_v18 }
 0x749   :  { %3316 = vmatpush3.bf16.msra.mxu1 %v1045_v19  ;;  %3317 = vmatprep.mubr.msk.bf16.mxu1 %vm3643_vm1, %v3642_v16 }
 0x74a   :  { %3327 = vmatprep.subr.bf16.mxu1 %v3642_v16 }
 0x74b   :  { %v3575_v20 = vpop.eup %3574 }
 0x74c   :  { %v1037_v11 = vmul.f32 %v3575_v20, %v3571_v3 }
 0x74e   :  { %v1038_v21 = vpack.c.bf16 %v1037_v11, %v1037_v11 }
 0x750   :  { %3318 = vmatmul.mubr.msk.bf16.vlgmr.msra.gmra.mrb[28].mxu1 %vm583_vm4, %v1038_v21 }
 0x751   :  { %3328 = vmatpush3.bf16.msra.mxu1 %v3931_v5  ;;  %3329 = vmatprep.mubr.msk.bf16.mxu1 %vm3643_vm1, %v3642_v16 }
 0x752   :  { %3341 = vmatprep.subr.bf16.mxu1 %v3642_v16 }
 0x81b   :  { %v968_v30 = vpop.f32.mrb[24].mxu1 }
 0x81c   :  { %v974_v22 = vpack.c.bf16 %v968_v30, %v968_v30  ;;  %v3307_v23 = vpop.f32.mrb[25].mxu1 }
 0x81d   :  { %v971_v24 = vpop.f32.mrb[26].mxu1 }
 0x81e   :  { %v3308_v25 = vpop.f32.mrb[27].mxu1  ;;  %3330 = vmatmul.mubr.msk.bf16.vlgmr.msra.gmra.mrb[32].mxu1 %vm528_vm2, %v974_v22 }
 0x81f   :  { %3349 = vmatprep.mubr.msk.bf16.mxu1 %vm3643_vm1, %v3642_v16  ;;  %3342 = vmatpush3.bf16.msra.mxu1 %v3528_v6 }
 0x820   :  { %3343 = vmatprep.subr.bf16.mxu1 %v3642_v16 }
 0x823   :  { %v1081_v59 = vpop.f32.mrb[28].mxu1  ;;  %3344 = vmatpush3.bf16.msra.mxu1 %v3529_v7  ;;  %v2991_v7 = vld [vmem:[%s4370_s18] ss:$0 sm:$0xff] }
 0x824   :  { %v1087_v26 = vpack.c.bf16 %v1081_v59, %v1081_v59  ;;  %v3319_v58 = vpop.f32.mrb[29].mxu1  ;;  %3345 = vmatprep.subr.bf16.mxu1 %v3642_v16 }
 0x825   :  { %v1084_v27 = vpop.f32.mrb[30].mxu1 }
 0x826   :  { %v3320_v5 = vpop.f32.mrb[31].mxu1  ;;  %3324 = vmatmul.mubr.msk.bf16.vlgmr.msra.gmra.mrb[32].mxu0 %vm528_vm2, %v1087_v26 }
 0x827   :  { %3337 = vmatprep.mubr.msk.bf16.mxu0 %vm3643_vm1, %v3642_v16  ;;  %3334 = vmatpush3.bf16.msra.mxu0 %v3526_v49 }
 0x828   :  { %3335 = vmatprep.subr.bf16.mxu0 %v3642_v16  ;;  %3346 = vmatpush3.bf16.msra.mxu1 %v3530_v8 }
 0x829   :  { %3347 = vmatprep.subr.bf16.mxu1 %v3642_v16 }
 0x82b   :  { %3336 = vmatpush3.bf16.msra.mxu0 %v3527_v50 }
 0x82c   :  { %3353 = vmatprep.subr.bf16.mxu0 %v3642_v16 }
 0x8f1   :  { %v1168_v28 = vpop.f32.mrb[32].mxu1 }
 0x8f2   :  { %v3331_v29 = vpop.f32.mrb[33].mxu1 }
 0x8f3   :  { %v1171_v31 = vpop.f32.mrb[34].mxu1 }
 0x8f4   :  { %v3332_v32 = vpop.f32.mrb[35].mxu1 }
 0x8f9   :  { %v1125_v36 = vpop.f32.mrb[32].mxu0 }
 0x8fa   :  { %v1169_v37 = vadd.f32 %v1168_v28, %v1125_v36  ;;  %v3325_v38 = vpop.f32.mrb[33].mxu0 }
 0x8fb   :  { %v1128_v39 = vpop.f32.mrb[34].mxu0 }
 0x8fc   :  { %v1182_v40 = vadd.f32 %v2978_v57, %v1169_v37  ;;  %v3326_v41 = vpop.f32.mrb[35].mxu0  ;;  %v2985_v37 = vld [vmem:[%s4369_s17] ss:$0 sm:$0xff] }
 0x8fe   :  { %v1184_v42 = vadd.f32 %v1182_v40, %v3810_v34  ;;  %v1201_v34 = vpop.xlane.xlu0 %1200 }
 0x8ff   :  { %v1205_v51 = vmul.f32 0.03125, %v1201_v34 }
 0x900   :  { %v1190_v43 = vsel %vm83_vm0, %v1184_v42, 0.0 }
 0x901   :  { %1191 = vadd.xlane.f32.xlu1 %v1190_v43  ;;  %v1207_v52 = vadd.f32 1e-12, %v1205_v51 }
 0x903   :  { %3576 = vrsqrt.f32 %v1207_v52 }
 0x90d   :  { %v3577_v56 = vpop.eup %3576 }
 0x90e   :  { %v1211_v57 = vmul.f32 %v3577_v56, %v3982_v9  ;;  %v3531_v9 = vld [vmem:[%s4368_s16 + $0x18] sm:$0xff]  }
 0x90f   :  { %3348 = vmatpush3.bf16.msra.mxu1 %v3531_v9 }
 0x910   :  { %v1219_v62 = vmul.f32 %v2979_v60, %v1211_v57  ;;  %3369 = vmatprep.subr.bf16.mxu1 %v3642_v16  ;;  %v3532_v57 = vld [vmem:[%s4394_s0 + $0x20] sm:$0xff]  }
 0x912   :  { %v1227_v2 = vadd.f32 %v2980_v0, %v1219_v62  ;;  %v3535_v62 = vld [vmem:[%s4398_s30 + $0x28] sm:$0xff]  }
 0x98e   :  { %v1192_v44 = vpop.xlane.xlu1 %1191 }
 0x98f   :  { %v1194_v45 = vmul.f32 0.03125, %v1192_v44 }
 0x991   :  { %v1196_v46 = vsub.f32 %v1184_v42, %v1194_v45 }
 0x993   :  { %v1198_v47 = vmul.f32 %v1196_v46, %v1196_v46 }
 0x995   :  { %v1202_v48 = vsel %vm83_vm0, %v1198_v47, 0.0 }
 0x996   :  { %1203 = vadd.xlane.f32.xlu1 %v1202_v48 }
 0xa23   :  { %v1204_v53 = vpop.xlane.xlu1 %1203 }
 0xa24   :  { %v1206_v54 = vmul.f32 0.03125, %v1204_v53 }
 0xa26   :  { %v1208_v55 = vadd.f32 1e-12, %v1206_v54 }
 0xa28   :  { %3578 = vrsqrt.f32 %v1208_v55 }
 0xa32   :  { %v3579_v61 = vpop.eup %3578 }
 0xa33   :  { %v1212_v63 = vmul.f32 %v3579_v61, %v1196_v46  ;;  %v3534_v61 = vld [vmem:[%s4394_s0 + $0x28] sm:$0xff]  }
 0xa35   :  { %v1220_v1 = vmul.f32 %v2979_v60, %v1212_v63  ;;  %v3533_v60 = vld [vmem:[%s4398_s30 + $0x20] sm:$0xff]  }
 0xa37   :  { %v1228_v3 = vadd.f32 %v2980_v0, %v1220_v1 }
 0xa39   :  { %v1229_v4 = vpack.c.bf16 %v1228_v3, %v1227_v2 }
 0xa3b   :  { %3338 = vmatmul.mubr.msk.bf16.vlgmr.msra.gmra.mrb[36].mxu0 %vm83_vm0, %v1229_v4 }
 0xa3c   :  { %3357 = vmatprep.mubr.msk.bf16.mxu0 %vm3643_vm1, %v3642_v16  ;;  %3354 = vmatpush3.bf16.msra.mxu0 %v3532_v57 }
 0xa3d   :  { %3355 = vmatprep.subr.bf16.mxu0 %v3642_v16 }
 0xa40   :  { %3356 = vmatpush3.bf16.msra.mxu0 %v3534_v61  ;;  %v3025_v61 = vld [vmem:[%s4399_s5 + $0x3] ss:$0 sm:$0xff] }
 0xa41   :  { %3361 = vmatprep.subr.bf16.mxu0 %v3642_v16 }
 0xb0e   :  { %v1290_v13 = vpop.f32.mrb[36].mxu0 }
 0xb0f   :  { %v1291_v33 = vadd.f32 %v2981_v10, %v1290_v13  ;;  %v3339_v14 = vpop.f32.mrb[37].mxu0 }
 0xb10   :  { %v1293_v15 = vpop.f32.mrb[38].mxu0 }
 0xb11   :  { %v1297_v17 = vmul.f32 %v1291_v33, %v1291_v33  ;;  %v1294_v18 = vadd.f32 %v2981_v10, %v1293_v15  ;;  %v3340_v19 = vpop.f32.mrb[39].mxu0 }
 0xb12   :  { %v3537_v19 = vld [vmem:[%s4395_s3 + $0x30] sm:$0xff]  }
 0xb13   :  { %v1299_v20 = vmul.f32 %v1297_v17, %v1291_v33  ;;  %v1298_v11 = vmul.f32 %v1294_v18, %v1294_v18 }
 0xb15   :  { %v1301_v21 = vmul.f32 0.044715, %v1299_v20  ;;  %v1300_v30 = vmul.f32 %v1298_v11, %v1294_v18  ;;  %v3538_v11 = vld [vmem:[%s4395_s3 + $0x28] sm:$0xff]  }
 0xb17   :  { %v1303_v22 = vadd.f32 %v1301_v21, %v1291_v33  ;;  %v1302_v23 = vmul.f32 0.044715, %v1300_v30  ;;  %v3539_v21 = vld [vmem:[%s4395_s3 + $0x38] sm:$0xff]   ;;  %v3540_v30 = vld [vmem:[%s4394_s0 + $0x30] sm:$0xff]  }
 0xb19   :  { %v1305_v24 = vmul.f32 0.7978846, %v1303_v22  ;;  %v1304_v25 = vadd.f32 %v1302_v23, %v1294_v18  ;;  %v3541_v22 = vld [vmem:[%s4394_s0 + $0x38] sm:$0xff]   ;;  %v3542_v23 = vld [vmem:[%s4398_s30 + $0x30] sm:$0xff]  }
 0xb1b   :  { %3580 = vtanh.f32 %v1305_v24  ;;  %v1306_v59 = vmul.f32 0.7978846, %v1304_v25  ;;  %v3543_v24 = vld [vmem:[%s4398_s30 + $0x38] sm:$0xff]   ;;  %v2998_v25 = vld [vmem:[%s4399_s5 + $0x2] ss:$0 sm:$0xff] }
 0xb1d   :  { %3582 = vtanh.f32 %v1306_v59 }
 0xb25   :  { %v3581_v26 = vpop.eup %3580 }
 0xb26   :  { %v1309_v58 = vadd.f32 1.0, %v3581_v26  ;;  %v3016_v26 = vld [vmem:[%s4361_s9 + $0x2] ss:$0 sm:$0xff] }
 0xb27   :  { %v3583_v27 = vpop.eup %3582 }
 0xb28   :  { %v1311_v5 = vmul.f32 0.5, %v1309_v58  ;;  %v1310_v28 = vadd.f32 1.0, %v3583_v27 }
 0xb2a   :  { %v1312_v29 = vmul.f32 0.5, %v1310_v28  ;;  %v1313_v31 = vmul.f32 %v1311_v5, %v1291_v33  ;;  %v2992_v33 = vld [vmem:[%s4371_s19] ss:$0 sm:$0xff] }
 0xb2c   :  { %v1314_v32 = vmul.f32 %v1312_v29, %v1294_v18  ;;  %v3536_v18 = vld [vmem:[%s4395_s3 + $0x20] sm:$0xff]  }
 0xb2e   :  { %v1315_v36 = vpack.c.bf16 %v1314_v32, %v1313_v31 }
 0xb30   :  { %3350 = vmatmul.mubr.msk.bf16.vlgmr.msra.gmra.mrb[36].mxu1 %vm1355_vm5, %v1315_v36 }
 0xb31   :  { %3373 = vmatprep.mubr.msk.bf16.mxu1 %vm3643_vm1, %v3642_v16  ;;  %3370 = vmatpush3.bf16.msra.mxu1 %v3533_v60 }
 0xb32   :  { %3371 = vmatprep.subr.bf16.mxu1 %v3642_v16 }
 0xb35   :  { %3372 = vmatpush3.bf16.msra.mxu1 %v3535_v62 }
 0xb36   :  { %3385 = vmatprep.subr.bf16.mxu1 %v3642_v16 }
 0xc03   :  { %v1393_v38 = vpop.f32.mrb[36].mxu1 }
 0xc04   :  { %v1394_v39 = vadd.f32 %v2985_v37, %v1393_v38  ;;  %v3351_v40 = vpop.f32.mrb[37].mxu1 }
 0xc05   :  { %v1396_v41 = vpop.f32.mrb[38].mxu1 }
 0xc06   :  { %v1397_v42 = vadd.f32 %v2985_v37, %v1396_v41  ;;  %v3352_v43 = vpop.f32.mrb[39].mxu1  ;;  %v1400_v44 = vadd.f32 %v1394_v39, %v1227_v2 }
 0xc07   :  { %v3007_v43 = vld [vmem:[%s4400_s28 + $0x2] ss:$0 sm:$0xff] }
 0xc08   :  { %v1404_v45 = vsel %vm83_vm0, %v1400_v44, 0.0  ;;  %v1401_v46 = vadd.f32 %v1397_v42, %v1228_v3 }
 0xc09   :  { %1405 = vadd.xlane.f32.xlu0 %v1404_v45  ;;  %v3034_v45 = vld [vmem:[%s4400_s28 + $0x3] ss:$0 sm:$0xff] }
 0xc0a   :  { %v1407_v47 = vsel %vm83_vm0, %v1401_v46, 0.0 }
 0xc0b   :  { %1408 = vadd.xlane.f32.xlu1 %v1407_v47 }
 0xc96   :  { %v1406_v48 = vpop.xlane.xlu0 %1405 }
 0xc97   :  { %v1410_v49 = vmul.f32 0.03125, %v1406_v48 }
 0xc98   :  { %v1409_v50 = vpop.xlane.xlu1 %1408 }
 0xc99   :  { %v1412_v34 = vsub.f32 %v1400_v44, %v1410_v49  ;;  %v1411_v51 = vmul.f32 0.03125, %v1409_v50 }
 0xc9b   :  { %v1413_v52 = vsub.f32 %v1401_v46, %v1411_v51  ;;  %v1414_v53 = vmul.f32 %v1412_v34, %v1412_v34 }
 0xc9d   :  { %v1416_v54 = vsel %vm83_vm0, %v1414_v53, 0.0  ;;  %v1415_v55 = vmul.f32 %v1413_v52, %v1413_v52 }
 0xc9e   :  { %1417 = vadd.xlane.f32.xlu0 %v1416_v54 }
 0xc9f   :  { %v1419_v56 = vsel %vm83_vm0, %v1415_v55, 0.0 }
 0xca0   :  { %1420 = vadd.xlane.f32.xlu1 %v1419_v56 }
 0xd2b   :  { %v1418_v63 = vpop.xlane.xlu0 %1417 }
 0xd2c   :  { %v1422_v0 = vmul.f32 0.03125, %v1418_v63 }
 0xd2d   :  { %v1421_v1 = vpop.xlane.xlu1 %1420 }
 0xd2e   :  { %v1424_v2 = vadd.f32 1e-12, %v1422_v0  ;;  %v1423_v3 = vmul.f32 0.03125, %v1421_v1 }
 0xd30   :  { %3584 = vrsqrt.f32 %v1424_v2  ;;  %v1425_v4 = vadd.f32 1e-12, %v1423_v3 }
 0xd32   :  { %3586 = vrsqrt.f32 %v1425_v4 }
 0xd3a   :  { %v3585_v6 = vpop.eup %3584 }
 0xd3b   :  { %v1428_v8 = vmul.f32 %v3585_v6, %v1412_v34 }
 0xd3c   :  { %v3587_v9 = vpop.eup %3586 }
 0xd3d   :  { %v1436_v10 = vmul.f32 %v2991_v7, %v1428_v8  ;;  %v1429_v13 = vmul.f32 %v3587_v9, %v1413_v52 }
 0xd3f   :  { %v1437_v14 = vmul.f32 %v2991_v7, %v1429_v13  ;;  %v4076_v15 = vadd.f32 %v2992_v33, %v1436_v10  ;;  %v3043_v7 = vld [vmem:[%s4361_s9 + $0x3] ss:$0 sm:$0xff] }
 0xd41   :  { %v4078_v17 = vadd.f32 %v2992_v33, %v1437_v14 }
 0xd43   :  { %v1446_v20 = vpack.c.bf16 %v4078_v17, %v4076_v15 }
 0xd45   :  { %3358 = vmatmul.mubr.msk.bf16.vlgmr.msra.gmra.mrb[40].mxu0 %vm83_vm0, %v1446_v20  ;;  %3374 = vmatmul.mubr.msk.bf16.vlgmr.msra.gmra.mrb[40].mxu1 %vm83_vm0, %v1446_v20 }
 0xd46   :  { %3362 = vmatpush3.bf16.msra.mxu0 %v3536_v18  ;;  %3386 = vmatpush3.bf16.msra.mxu1 %v3537_v19 }
 0xd47   :  { %3363 = vmatprep.subr.bf16.mxu0 %v3642_v16  ;;  %3387 = vmatprep.subr.bf16.mxu1 %v3642_v16 }
 0xd48   :  { %3365 = vmatprep.mubr.msk.bf16.mxu0 %vm3643_vm1, %v3642_v16  ;;  %3389 = vmatprep.mubr.msk.bf16.mxu1 %vm3643_vm1, %v3642_v16 }
 0xd4a   :  { %3364 = vmatpush3.bf16.msra.mxu0 %v3538_v11  ;;  %3388 = vmatpush3.bf16.msra.mxu1 %v3539_v21 }
 0xd4b   :  { %3377 = vmatprep.subr.bf16.mxu0 %v3642_v16  ;;  %3401 = vmatprep.subr.bf16.mxu1 %v3642_v16 }
 0xd4d   :  { %3366 = vmatmul.mubr.msk.bf16.vlgmr.msra.gmra.mrb[44].mxu0 %vm83_vm0, %v1446_v20  ;;  %3390 = vmatmul.mubr.msk.bf16.vlgmr.msra.gmra.mrb[44].mxu1 %vm83_vm0, %v1446_v20 }
 0xd4e   :  { %3378 = vmatpush3.bf16.msra.mxu0 %v3540_v30  ;;  %3381 = vmatprep.mubr.msk.bf16.mxu0 %vm3643_vm1, %v3642_v16 }
 0xd4f   :  { %3379 = vmatprep.subr.bf16.mxu0 %v3642_v16  ;;  %3403 = vmatprep.mubr.msk.bf16.mxu1 %vm3643_vm1, %v3642_v16 }
 0xd52   :  { %3380 = vmatpush3.bf16.msra.mxu0 %v3541_v22 }
 0xd53   :  { %3393 = vmatprep.subr.bf16.mxu0 %v3642_v16 }
 0xd55   :  { %3382 = vmatmul.mubr.msk.bf16.vlgmr.msra.gmra.mrb[48].mxu0 %vm83_vm0, %v1446_v20 }
 0xd56   :  { %3394 = vmatpush3.bf16.msra.mxu0 %v3542_v23  ;;  %3397 = vmatprep.mubr.msk.bf16.mxu0 %vm3643_vm1, %v3642_v16 }
 0xd57   :  { %3395 = vmatprep.subr.bf16.mxu0 %v3642_v16 }
 0xd5a   :  { %3396 = vmatpush3.bf16.msra.mxu0 %v3543_v24 }
 0xd5b   :  { %3407 = vmatprep.subr.bf16.mxu0 %v3642_v16 }
 0xd5d   :  { %3398 = vmatmul.mubr.msk.bf16.vlgmr.msra.gmra.mrb[52].mxu0 %vm83_vm0, %v1446_v20 }
 0xd5e   :  { %3409 = vmatprep.mubr.msk.bf16.mxu0 %vm3643_vm1, %v3642_v16 }
 0xe18   :  { %v1509_v59 = vpop.f32.mrb[40].mxu0  ;;  %v1643_v58 = vpop.f32.mrb[40].mxu1 }
 0xe19   :  { %v3359_v27 = vpop.f32.mrb[41].mxu0  ;;  %v3375_v5 = vpop.f32.mrb[41].mxu1  ;;  %v1510_v31 = vadd.f32 %v2998_v25, %v1509_v59  ;;  %v1644_v32 = vadd.f32 %v3016_v26, %v1643_v58 }
 0xe1a   :  { %v1512_v28 = vpop.f32.mrb[42].mxu0  ;;  %v1646_v29 = vpop.f32.mrb[42].mxu1 }
 0xe1b   :  { %v1513_v36 = vadd.f32 %v2998_v25, %v1512_v28  ;;  %v1647_v37 = vadd.f32 %v3016_v26, %v1646_v29  ;;  %v3360_v38 = vpop.f32.mrb[43].mxu0  ;;  %v3376_v39 = vpop.f32.mrb[43].mxu1 }
 0xe1d   :  { %v4138_v40 = vpack.c.bf16 %v1513_v36, %v1510_v31  ;;  %v4140_v41 = vpack.c.bf16 %v1647_v37, %v1644_v32 }
 0xe1f   :  { %v1916_v42 = vsel %vm599_vm3, %v4140_v41, 0 }
 0xe20   :  { %v1576_v44 = vpop.f32.mrb[44].mxu0  ;;  %v1777_v46 = vpop.f32.mrb[44].mxu1  ;;  %3408 = vmatpush3.bf16.msra.mxu0 %v1916_v42 }
 0xe21   :  { %v3367_v47 = vpop.f32.mrb[45].mxu0  ;;  %v3391_v48 = vpop.f32.mrb[45].mxu1  ;;  %3419 = vmatprep.subr.bf16.mxu0 %v3642_v16  ;;  %v1577_v34 = vadd.f32 %v3007_v43, %v1576_v44  ;;  %v1778_v51 = vadd.f32 %v3034_v45, %v1777_v46 }
 0xe22   :  { %v1579_v49 = vpop.f32.mrb[46].mxu0  ;;  %v1780_v50 = vpop.f32.mrb[46].mxu1 }
 0xe23   :  { %v1580_v52 = vadd.f32 %v3007_v43, %v1579_v49  ;;  %v1781_v53 = vadd.f32 %v3034_v45, %v1780_v50  ;;  %v3368_v54 = vpop.f32.mrb[47].mxu0  ;;  %v3392_v55 = vpop.f32.mrb[47].mxu1 }
 0xe25   :  { %v4151_v56 = vpack.c.bf16 %v1580_v52, %v1577_v34  ;;  %v4153_v57 = vpack.c.bf16 %v1781_v53, %v1778_v51  ;;  %v4194_v34 = vld [vmem:[%s4362_s10 + $0x10] sm:$0xff]   ;;  %v3545_v52 = vld [vmem:[%s4362_s10 + $0x18] sm:$0xff]   ;;  %v2235_v53 = vrot.slane %v4140_v41, 4 }
 0xe27   :  { %v1856_v60 = vsel %vm528_vm2, %v4151_v56, 0  ;;  %v1966_v6 = vsel %vm528_vm2, %v4153_v57, 0 }
 0xe28   :  { %v1710_v62 = vpop.f32.mrb[48].mxu0  ;;  %3402 = vmatpush3.bf16.xpose.msra.mxu1 %v1856_v60 }
 0xe29   :  { %v3383_v63 = vpop.f32.mrb[49].mxu0  ;;  %3413 = vmatprep.subr.bf16.mxu1 %v3642_v16  ;;  %v1711_v1 = vadd.f32 %v3025_v61, %v1710_v62 }
 0xe2a   :  { %v1713_v0 = vpop.f32.mrb[50].mxu0  ;;  %v2240_v63 = vsel %vm599_vm3, %v2235_v53, 0 }
 0xe2b   :  { %v1714_v2 = vadd.f32 %v3025_v61, %v1713_v0  ;;  %v3384_v3 = vpop.f32.mrb[51].mxu0  ;;  %v2173_v0 = vrot.slane %v4151_v56, 4 }
 0xe2d   :  { %v4161_v4 = vpack.c.bf16 %v1714_v2, %v1711_v1 }
 0xe2f   :  { %3404 = vmatmul.mubr.msk.bf16.vlgmr.msra.gmra.mrb[48].mxu1 %vm528_vm2, %v4138_v40 }
 0xe30   :  { %v1844_v8 = vpop.f32.mrb[52].mxu0  ;;  %3414 = vmatpush3.bf16.xpose.msra.mxu1 %v1966_v6  ;;  %3415 = vmatprep.mubr.msk.bf16.mxu1 %vm3643_vm1, %v3642_v16 }
 0xe31   :  { %v3399_v9 = vpop.f32.mrb[53].mxu0  ;;  %3425 = vmatprep.subr.bf16.mxu1 %v3642_v16  ;;  %v1845_v13 = vadd.f32 %v3043_v7, %v1844_v8  ;;  %v2286_v8 = vrot.slane %v4153_v57, 4 }
 0xe32   :  { %v1847_v10 = vpop.f32.mrb[54].mxu0  ;;  %v2171_v9 = vrot.slane %v4138_v40, 4 }
 0xe33   :  { %v1848_v33 = vadd.f32 %v3043_v7, %v1847_v10  ;;  %v3400_v14 = vpop.f32.mrb[55].mxu0  ;;  %v2178_v7 = vsel %vm528_vm2, %v2173_v0, 0  ;;  %v2291_v56 = vsel %vm528_vm2, %v2286_v8, 0  ;;  %v2284_v10 = vrot.slane %v4161_v4, 4 }
 0xe35   :  { %v4173_v18 = vpack.c.bf16 %v1848_v33, %v1845_v13 }
 0xe37   :  { %3416 = vmatmul.mubr.msk.bf16.vlgmr.msra.gmra.mrb[52].mxu1 %vm528_vm2, %v4161_v4  ;;  %v2026_v48 = vsel %vm599_vm3, %v4173_v18, 0 }
 0xe38   :  { %3427 = vmatprep.mubr.msk.bf16.mxu1 %vm3643_vm1, %v3642_v16  ;;  %3426 = vmatpush3.bf16.msra.mxu1 %v3545_v52 }
 0xe39   :  { %3437 = vmatprep.subr.bf16.mxu1 %v3642_v16 }
 0xf02   :  { %v1892_v19 = vpop.f32.mrb[48].mxu1 }
 0xf03   :  { %v1898_v20 = vmul.f32 0.25, %v1892_v19  ;;  %v3405_v11 = vpop.f32.mrb[49].mxu1 }
 0xf04   :  { %v1895_v21 = vpop.f32.mrb[50].mxu1 }
 0xf05   :  { %v3406_v30 = vpop.f32.mrb[51].mxu1  ;;  %v1899_v22 = vadd.f32 %v3914_v35, %v1898_v20 }
 0xf07   :  { %v1900_v23 = vsel %vm583_vm4, %v1899_v22, -inf }
 0xf08   :  { %1901 = vmax.xlane.f32.xlu0 %v1900_v23 }
 0xf0a   :  { %v2002_v24 = vpop.f32.mrb[52].mxu1 }
 0xf0b   :  { %v2008_v25 = vmul.f32 0.25, %v2002_v24  ;;  %v3417_v59 = vpop.f32.mrb[53].mxu1 }
 0xf0c   :  { %v2005_v26 = vpop.f32.mrb[54].mxu1 }
 0xf0d   :  { %v3418_v58 = vpop.f32.mrb[55].mxu1  ;;  %v2009_v27 = vadd.f32 %v3914_v35, %v2008_v25 }
 0xf0f   :  { %v2010_v5 = vsel %vm583_vm4, %v2009_v27, -inf }
 0xf10   :  { %2011 = vmax.xlane.f32.xlu1 %v2010_v5 }
 0xf95   :  { %v1902_v28 = vpop.xlane.xlu0 %1901 }
 0xf96   :  { %v1903_v29 = vsub.f32 %v1899_v22, %v1902_v28 }
 0xf98   :  { %v1904_v31 = vmul.f32 1.442695, %v1903_v29 }
 0xf9a   :  { %3588 = vpow2.f32 %v1904_v31 }
 0xf9d   :  { %v2012_v32 = vpop.xlane.xlu1 %2011 }
 0xf9e   :  { %v2013_v36 = vsub.f32 %v2009_v27, %v2012_v32 }
 0xfa0   :  { %v2014_v37 = vmul.f32 1.442695, %v2013_v36 }
 0xfa2   :  { %3590 = vpow2.f32 %v2014_v37 }
 0xfa4   :  { %v3589_v38 = vpop.eup %3588 }
 0xfa5   :  { %v1906_v39 = vsel %vm583_vm4, %v3589_v38, 0.0 }
 0xfa6   :  { %1907 = vadd.xlane.f32.xlu0 %v1906_v39  ;;  %v3066_v39 = vld [vmem:[%s4363_s11 + $0x1] ss:$0 sm:$0xff] }
 0xfac   :  { %v3591_v42 = vpop.eup %3590 }
 0xfad   :  { %v2016_v43 = vsel %vm583_vm4, %v3591_v42, 0.0 }
 0xfae   :  { %2017 = vadd.xlane.f32.xlu1 %v2016_v43 }
0x1033   :  { %v1908_v35 = vpop.xlane.xlu0 %1907 }
0x1034   :  { %3592 = vrcp.f32 %v1908_v35 }
0x103b   :  { %v2018_v44 = vpop.xlane.xlu1 %2017 }
0x103c   :  { %3594 = vrcp.f32 %v2018_v44 }
0x103e   :  { %v3593_v45 = vpop.eup %3592 }
0x103f   :  { %v1910_v46 = vmul.f32 %v3593_v45, %v3589_v38 }
0x1041   :  { %v1911_v47 = vpack.c.bf16 %v1910_v46, %v1910_v46 }
0x1043   :  { %3410 = vmatmul.mubr.msk.bf16.vlgmr.msra.gmra.mrb[56].mxu0 %vm583_vm4, %v1911_v47 }
0x1044   :  { %3420 = vmatpush3.bf16.msra.mxu0 %v2026_v48  ;;  %3421 = vmatprep.mubr.msk.bf16.mxu0 %vm3643_vm1, %v3642_v16 }
0x1045   :  { %3431 = vmatprep.subr.bf16.mxu0 %v3642_v16 }
0x1046   :  { %v3595_v49 = vpop.eup %3594 }
0x1047   :  { %v2020_v50 = vmul.f32 %v3595_v49, %v3591_v42 }
0x1049   :  { %v2021_v51 = vpack.c.bf16 %v2020_v50, %v2020_v50 }
0x104b   :  { %3422 = vmatmul.mubr.msk.bf16.vlgmr.msra.gmra.mrb[60].mxu0 %vm583_vm4, %v2021_v51 }
0x104c   :  { %3432 = vmatpush3.bf16.msra.mxu0 %v4194_v34  ;;  %3433 = vmatprep.mubr.msk.bf16.mxu0 %vm3643_vm1, %v3642_v16 }
0x104d   :  { %3443 = vmatprep.subr.bf16.mxu0 %v3642_v16 }
0x1116   :  { %v1952_v54 = vpop.f32.mrb[56].mxu0 }
0x1117   :  { %v1958_v55 = vpack.c.bf16 %v1952_v54, %v1952_v54  ;;  %v3411_v60 = vpop.f32.mrb[57].mxu0 }
0x1118   :  { %v1955_v61 = vpop.f32.mrb[58].mxu0  ;;  %v2348_v60 = vrot.slane %v4173_v18, 4 }
0x1119   :  { %v3412_v62 = vpop.f32.mrb[59].mxu0  ;;  %3434 = vmatmul.mubr.msk.bf16.vlgmr.msra.gmra.mrb[64].mxu0 %vm528_vm2, %v1958_v55 }
0x111a   :  { %3444 = vmatpush3.bf16.msra.mxu0 %v2240_v63  ;;  %3445 = vmatprep.mubr.msk.bf16.mxu0 %vm3643_vm1, %v3642_v16  ;;  %v2353_v63 = vsel %vm599_vm3, %v2348_v60, 0 }
0x111b   :  { %3455 = vmatprep.subr.bf16.mxu0 %v3642_v16 }
0x111e   :  { %v2062_v1 = vpop.f32.mrb[60].mxu0 }
0x111f   :  { %v2068_v2 = vpack.c.bf16 %v2062_v1, %v2062_v1  ;;  %v3423_v41 = vpop.f32.mrb[61].mxu0 }
0x1120   :  { %v2065_v3 = vpop.f32.mrb[62].mxu0 }
0x1121   :  { %v3424_v6 = vpop.f32.mrb[63].mxu0  ;;  %3428 = vmatmul.mubr.msk.bf16.vlgmr.msra.gmra.mrb[56].mxu1 %vm528_vm2, %v2068_v2 }
0x1122   :  { %3438 = vmatpush3.bf16.xpose.msra.mxu1 %v2178_v7  ;;  %3439 = vmatprep.mubr.msk.bf16.mxu1 %vm3643_vm1, %v3642_v16 }
0x1123   :  { %3449 = vmatprep.subr.bf16.mxu1 %v3642_v16 }
0x1129   :  { %3440 = vmatmul.mubr.msk.bf16.vlgmr.msra.gmra.mrb[60].mxu1 %vm528_vm2, %v2171_v9 }
0x112a   :  { %3450 = vmatpush3.bf16.xpose.msra.mxu1 %v2291_v56  ;;  %3451 = vmatprep.mubr.msk.bf16.mxu1 %vm3643_vm1, %v3642_v16 }
0x112b   :  { %3461 = vmatprep.subr.bf16.mxu1 %v3642_v16 }
0x1131   :  { %3452 = vmatmul.mubr.msk.bf16.vlgmr.msra.gmra.mrb[64].mxu1 %vm528_vm2, %v2284_v10 }
0x1132   :  { %3462 = vmatpush3.bf16.msra.mxu1 %v3545_v52  ;;  %3463 = vmatprep.mubr.msk.bf16.mxu1 %vm3643_vm1, %v3642_v16 }
0x1133   :  { %3473 = vmatprep.subr.bf16.mxu1 %v3642_v16 }
0x11ec   :  { %v2164_v40 = vpop.f32.mrb[64].mxu0 }
0x11ed   :  { %v3435_v57 = vpop.f32.mrb[65].mxu0 }
0x11ee   :  { %v2167_v13 = vpop.f32.mrb[66].mxu0 }
0x11ef   :  { %v3436_v33 = vpop.f32.mrb[67].mxu0 }
0x11f4   :  { %v2115_v14 = vpop.f32.mrb[56].mxu1 }
0x11f5   :  { %v2165_v19 = vadd.f32 %v2164_v40, %v2115_v14  ;;  %v3429_v20 = vpop.f32.mrb[57].mxu1 }
0x11f6   :  { %v2118_v11 = vpop.f32.mrb[58].mxu1 }
0x11f7   :  { %v3430_v21 = vpop.f32.mrb[59].mxu1  ;;  %v2490_v35 = vadd.f32 %v3066_v39, %v2165_v19 }
0x11fc   :  { %v2214_v30 = vpop.f32.mrb[60].mxu1 }
0x11fd   :  { %v2220_v22 = vmul.f32 0.25, %v2214_v30  ;;  %v3441_v4 = vpop.f32.mrb[61].mxu1 }
0x11fe   :  { %v2217_v23 = vpop.f32.mrb[62].mxu1 }
0x11ff   :  { %v3442_v24 = vpop.f32.mrb[63].mxu1  ;;  %v2221_v25 = vadd.f32 %v3969_v12, %v2220_v22 }
0x1201   :  { %v2222_v59 = vsel %vm583_vm4, %v2221_v25, -inf }
0x1202   :  { %2223 = vmax.xlane.f32.xlu0 %v2222_v59 }
0x1204   :  { %v2327_v26 = vpop.f32.mrb[64].mxu1 }
0x1205   :  { %v2333_v58 = vmul.f32 0.25, %v2327_v26  ;;  %v3453_v27 = vpop.f32.mrb[65].mxu1 }
0x1206   :  { %v2330_v5 = vpop.f32.mrb[66].mxu1  ;;  %v3547_v27 = vld [vmem:[%s4366_s14 + $0x18] sm:$0xff]  }
0x1207   :  { %v3454_v28 = vpop.f32.mrb[67].mxu1  ;;  %v2334_v29 = vadd.f32 %v3969_v12, %v2333_v58  ;;  %v2492_v12 = vadd.f32 %v2490_v35, %v4076_v15  ;;  %v3546_v58 = vld [vmem:[%s4366_s14 + $0x10] sm:$0xff]   ;;  %v3070_v35 = vld [vmem:[%s4365_s13 + $0x1] ss:$0 sm:$0xff] }
0x1209   :  { %v2335_v31 = vsel %vm583_vm4, %v2334_v29, -inf  ;;  %v2498_v46 = vsel %vm83_vm0, %v2492_v12, 0.0 }
0x120a   :  { %2336 = vmax.xlane.f32.xlu1 %v2335_v31 }
0x128f   :  { %v2224_v32 = vpop.xlane.xlu0 %2223 }
0x1290   :  { %v2225_v36 = vsub.f32 %v2221_v25, %v2224_v32 }
0x1292   :  { %v2226_v37 = vmul.f32 1.442695, %v2225_v36 }
0x1294   :  { %3596 = vpow2.f32 %v2226_v37 }
0x1297   :  { %v2337_v38 = vpop.xlane.xlu1 %2336 }
0x1298   :  { %v2338_v42 = vsub.f32 %v2334_v29, %v2337_v38  ;;  %v3069_v38 = vld [vmem:[%s4364_s12 + $0x1] ss:$0 sm:$0xff] }
0x129a   :  { %v2339_v43 = vmul.f32 1.442695, %v2338_v42 }
0x129c   :  { %3598 = vpow2.f32 %v2339_v43 }
0x129e   :  { %v3597_v44 = vpop.eup %3596 }
0x129f   :  { %v2228_v45 = vsel %vm583_vm4, %v3597_v44, 0.0 }
0x12a0   :  { %2229 = vadd.xlane.f32.xlu0 %v2228_v45 }
0x12a4   :  { %2499 = vadd.xlane.f32.xlu0 %v2498_v46 }
0x12a6   :  { %v3599_v47 = vpop.eup %3598 }
0x12a7   :  { %v2341_v48 = vsel %vm583_vm4, %v3599_v47, 0.0 }
0x12a8   :  { %2342 = vadd.xlane.f32.xlu1 %v2341_v48  ;;  %v3549_v48 = vld [vmem:[%s4368_s16 + $0x28] sm:$0xff]  }
0x132d   :  { %v2230_v49 = vpop.xlane.xlu0 %2229 }
0x132e   :  { %3600 = vrcp.f32 %v2230_v49  ;;  %v3550_v49 = vld [vmem:[%s4368_s16 + $0x30] sm:$0xff]  }
0x1331   :  { %v2500_v50 = vpop.xlane.xlu0 %2499 }
0x1332   :  { %v2504_v51 = vmul.f32 0.03125, %v2500_v50  ;;  %v3551_v50 = vld [vmem:[%s4368_s16 + $0x38] sm:$0xff]  }
0x1334   :  { %v4240_v52 = vsub.f32 %v2492_v12, %v2504_v51  ;;  %v3076_v51 = vld [vmem:[%s4367_s15 + $0x1] ss:$0 sm:$0xff] }
0x1335   :  { %v2343_v53 = vpop.xlane.xlu1 %2342 }
0x1336   :  { %3602 = vrcp.f32 %v2343_v53  ;;  %v2508_v54 = vmul.f32 %v4240_v52, %v4240_v52 }
0x1338   :  { %v3601_v15 = vpop.eup %3600  ;;  %v2510_v55 = vsel %vm83_vm0, %v2508_v54, 0.0 }
0x1339   :  { %v2232_v61 = vmul.f32 %v3601_v15, %v3597_v44  ;;  %2511 = vadd.xlane.f32.xlu0 %v2510_v55 }
0x133b   :  { %v2233_v62 = vpack.c.bf16 %v2232_v61, %v2232_v61 }
0x133d   :  { %3446 = vmatmul.mubr.msk.bf16.vlgmr.msra.gmra.mrb[68].mxu0 %vm583_vm4, %v2233_v62 }
0x133e   :  { %3456 = vmatpush3.bf16.msra.mxu0 %v2353_v63  ;;  %3457 = vmatprep.mubr.msk.bf16.mxu0 %vm3643_vm1, %v3642_v16 }
0x133f   :  { %3467 = vmatprep.subr.bf16.mxu0 %v3642_v16 }
0x1340   :  { %v3603_v0 = vpop.eup %3602 }
0x1341   :  { %v2345_v1 = vmul.f32 %v3603_v0, %v3599_v47  ;;  %v3548_v47 = vld [vmem:[%s4368_s16 + $0x20] sm:$0xff]  }
0x1343   :  { %v2346_v2 = vpack.c.bf16 %v2345_v1, %v2345_v1 }
0x1345   :  { %3458 = vmatmul.mubr.msk.bf16.vlgmr.msra.gmra.mrb[72].mxu0 %vm583_vm4, %v2346_v2 }
0x1346   :  { %3468 = vmatpush3.bf16.msra.mxu0 %v4194_v34  ;;  %3469 = vmatprep.mubr.msk.bf16.mxu0 %vm3643_vm1, %v3642_v16 }
0x1347   :  { %3481 = vmatprep.subr.bf16.mxu0 %v3642_v16 }
0x1410   :  { %v2276_v18 = vpop.f32.mrb[68].mxu0 }
0x1411   :  { %v2282_v41 = vpack.c.bf16 %v2276_v18, %v2276_v18  ;;  %v3447_v3 = vpop.f32.mrb[69].mxu0 }
0x1412   :  { %v2279_v6 = vpop.f32.mrb[70].mxu0 }
0x1413   :  { %v3448_v7 = vpop.f32.mrb[71].mxu0  ;;  %3470 = vmatmul.mubr.msk.bf16.vlgmr.msra.gmra.mrb[76].mxu0 %vm528_vm2, %v2282_v41 }
0x1414   :  { %3489 = vmatprep.mubr.msk.bf16.mxu0 %vm3643_vm1, %v3642_v16  ;;  %3482 = vmatpush3.bf16.msra.mxu0 %v3548_v47 }
0x1415   :  { %3483 = vmatprep.subr.bf16.mxu0 %v3642_v16 }
0x1418   :  { %v2389_v8 = vpop.f32.mrb[72].mxu0  ;;  %3484 = vmatpush3.bf16.msra.mxu0 %v3549_v48 }
0x1419   :  { %v2395_v9 = vpack.c.bf16 %v2389_v8, %v2389_v8  ;;  %v3459_v56 = vpop.f32.mrb[73].mxu0  ;;  %3485 = vmatprep.subr.bf16.mxu0 %v3642_v16 }
0x141a   :  { %v2392_v10 = vpop.f32.mrb[74].mxu0 }
0x141b   :  { %v3460_v34 = vpop.f32.mrb[75].mxu0  ;;  %3464 = vmatmul.mubr.msk.bf16.vlgmr.msra.gmra.mrb[68].mxu1 %vm528_vm2, %v2395_v9 }
0x141c   :  { %3477 = vmatprep.mubr.msk.bf16.mxu1 %vm3643_vm1, %v3642_v16  ;;  %3474 = vmatpush3.bf16.msra.mxu1 %v3546_v58 }
0x141d   :  { %3475 = vmatprep.subr.bf16.mxu1 %v3642_v16  ;;  %3486 = vmatpush3.bf16.msra.mxu0 %v3550_v49 }
0x141e   :  { %3487 = vmatprep.subr.bf16.mxu0 %v3642_v16 }
0x1420   :  { %3476 = vmatpush3.bf16.msra.mxu1 %v3547_v27 }
0x1421   :  { %3493 = vmatprep.subr.bf16.mxu1 %v3642_v16  ;;  %3488 = vmatpush3.bf16.msra.mxu0 %v3551_v50  ;;  %v3098_v50 = vld [vmem:[%s4371_s19 + $0x1] ss:$0 sm:$0xff] }
0x14e6   :  { %v2476_v40 = vpop.f32.mrb[76].mxu0 }
0x14e7   :  { %v3471_v57 = vpop.f32.mrb[77].mxu0 }
0x14e8   :  { %v2479_v13 = vpop.f32.mrb[78].mxu0 }
0x14e9   :  { %v3472_v33 = vpop.f32.mrb[79].mxu0 }
0x14ea   :  { %v3089_v33 = vld [vmem:[%s4369_s17 + $0x1] ss:$0 sm:$0xff] }
0x14ee   :  { %v2433_v14 = vpop.f32.mrb[68].mxu1 }
0x14ef   :  { %v2477_v19 = vadd.f32 %v2476_v40, %v2433_v14  ;;  %v3465_v20 = vpop.f32.mrb[69].mxu1 }
0x14f0   :  { %v2436_v11 = vpop.f32.mrb[70].mxu1 }
0x14f1   :  { %v2491_v21 = vadd.f32 %v3066_v39, %v2477_v19  ;;  %v3466_v30 = vpop.f32.mrb[71].mxu1 }
0x14f3   :  { %v2493_v22 = vadd.f32 %v2491_v21, %v4078_v17  ;;  %v2512_v17 = vpop.xlane.xlu0 %2511 }
0x14f4   :  { %v2516_v5 = vmul.f32 0.03125, %v2512_v17 }
0x14f5   :  { %v2501_v4 = vsel %vm83_vm0, %v2493_v22, 0.0 }
0x14f6   :  { %2502 = vadd.xlane.f32.xlu1 %v2501_v4  ;;  %v2518_v28 = vadd.f32 1e-12, %v2516_v5 }
0x14f8   :  { %3604 = vrsqrt.f32 %v2518_v28 }
0x1502   :  { %v3605_v36 = vpop.eup %3604 }
0x1503   :  { %v2522_v37 = vmul.f32 %v3605_v36, %v4240_v52  ;;  %v3553_v36 = vld [vmem:[%s4372_s20 + $0x8] sm:$0xff]  }
0x1505   :  { %v2530_v42 = vmul.f32 %v3069_v38, %v2522_v37 }
0x1507   :  { %v2538_v45 = vadd.f32 %v3070_v35, %v2530_v42 }
0x1583   :  { %v2503_v23 = vpop.xlane.xlu1 %2502 }
0x1584   :  { %v2505_v24 = vmul.f32 0.03125, %v2503_v23 }
0x1586   :  { %v2507_v25 = vsub.f32 %v2493_v22, %v2505_v24 }
0x1588   :  { %v2509_v59 = vmul.f32 %v2507_v25, %v2507_v25 }
0x158a   :  { %v2513_v26 = vsel %vm83_vm0, %v2509_v59, 0.0 }
0x158b   :  { %2514 = vadd.xlane.f32.xlu1 %v2513_v26 }
0x1618   :  { %v2515_v29 = vpop.xlane.xlu1 %2514 }
0x1619   :  { %v2517_v31 = vmul.f32 0.03125, %v2515_v29 }
0x161b   :  { %v2519_v32 = vadd.f32 1e-12, %v2517_v31 }
0x161d   :  { %3606 = vrsqrt.f32 %v2519_v32  ;;  %v3552_v32 = vld [vmem:[%s4372_s20] sm:$0xff]  }
0x1627   :  { %v3607_v39 = vpop.eup %3606 }
0x1628   :  { %v2523_v43 = vmul.f32 %v3607_v39, %v2507_v25 }
0x162a   :  { %v2531_v44 = vmul.f32 %v3069_v38, %v2523_v43 }
0x162c   :  { %v2539_v12 = vadd.f32 %v3070_v35, %v2531_v44 }
0x162e   :  { %v2540_v46 = vpack.c.bf16 %v2539_v12, %v2538_v45 }
0x1630   :  { %3478 = vmatmul.mubr.msk.bf16.vlgmr.msra.gmra.mrb[72].mxu1 %vm83_vm0, %v2540_v46  ;;  %v3097_v46 = vld [vmem:[%s4370_s18 + $0x1] ss:$0 sm:$0xff] }
0x1631   :  { %3497 = vmatprep.mubr.msk.bf16.mxu1 %vm3643_vm1, %v3642_v16  ;;  %3494 = vmatpush3.bf16.msra.mxu1 %v3552_v32 }
0x1632   :  { %3495 = vmatprep.subr.bf16.mxu1 %v3642_v16 }
0x1635   :  { %3496 = vmatpush3.bf16.msra.mxu1 %v3553_v36 }
0x1636   :  { %3501 = vmatprep.subr.bf16.mxu1 %v3642_v16 }
0x1703   :  { %v2603_v52 = vpop.f32.mrb[72].mxu1 }
0x1704   :  { %v2604_v53 = vadd.f32 %v3076_v51, %v2603_v52  ;;  %v3479_v54 = vpop.f32.mrb[73].mxu1 }
0x1705   :  { %v2606_v15 = vpop.f32.mrb[74].mxu1 }
0x1706   :  { %v2610_v55 = vmul.f32 %v2604_v53, %v2604_v53  ;;  %v2607_v60 = vadd.f32 %v3076_v51, %v2606_v15  ;;  %v3480_v61 = vpop.f32.mrb[75].mxu1 }
0x1707   :  { %v3099_v61 = vld [vmem:[%s4373_s21] ss:$0 sm:$0xff] }
0x1708   :  { %v2612_v62 = vmul.f32 %v2610_v55, %v2604_v53  ;;  %v2611_v63 = vmul.f32 %v2607_v60, %v2607_v60  ;;  %v3554_v55 = vld [vmem:[%s4374_s22] sm:$0xff]  }
0x170a   :  { %v2614_v0 = vmul.f32 0.044715, %v2612_v62  ;;  %v2613_v1 = vmul.f32 %v2611_v63, %v2607_v60 }
0x170c   :  { %v2616_v2 = vadd.f32 %v2614_v0, %v2604_v53  ;;  %v2615_v18 = vmul.f32 0.044715, %v2613_v1 }
0x170e   :  { %v2618_v41 = vmul.f32 0.7978846, %v2616_v2  ;;  %v2617_v3 = vadd.f32 %v2615_v18, %v2607_v60 }
0x1710   :  { %3608 = vtanh.f32 %v2618_v41  ;;  %v2619_v6 = vmul.f32 0.7978846, %v2617_v3 }
0x1712   :  { %3610 = vtanh.f32 %v2619_v6 }
0x171a   :  { %v3609_v7 = vpop.eup %3608 }
0x171b   :  { %v2622_v8 = vadd.f32 1.0, %v3609_v7 }
0x171c   :  { %v3611_v9 = vpop.eup %3610 }
0x171d   :  { %v2624_v56 = vmul.f32 0.5, %v2622_v8  ;;  %v2623_v10 = vadd.f32 1.0, %v3611_v9 }
0x171f   :  { %v2625_v34 = vmul.f32 0.5, %v2623_v10  ;;  %v2626_v40 = vmul.f32 %v2624_v56, %v2604_v53 }
0x1721   :  { %v2627_v57 = vmul.f32 %v2625_v34, %v2607_v60  ;;  %v3555_v60 = vld [vmem:[%s4374_s22 + $0x8] sm:$0xff]   ;;  %s3644_s22 = smov [#allocation2]  }
0x1722   :  { %s2910_s28 = sshll.u32 %s3644_s22, 4  ;;  %s2911_s28 = int_to_ptr.vmem [resolvable:$true] %s2910_s28 }
0x1723   :  { %v2628_v13 = vpack.c.bf16 %v2627_v57, %v2626_v40  ;;  %s3618_s21 = scalar_lea.vmem %s2911_s28, 32  ;;  %p3623_p1 = scmp.lt.s32.totalorder %s2911_s28, %s2911_s28 }
0x1724   :  { %p3619_p0 = scmp.ne.s32.totalorder %s2911_s28, %s3618_s21  ;;  %p3624_p2 = scmp.lt.s32.totalorder %s3618_s21, %s3618_s21 }
0x1725   :  { %3490 = vmatmul.mubr.msk.bf16.vlgmr.msra.gmra.mrb[80].mxu0 %vm1355_vm5, %v2628_v13 }
0x1726   :  { %p3625_p3 = por %p3624_p2, %p3623_p1 }
0x1728   :  { %p3626_p4 = pnand %p3625_p3, %p3619_p0 }
0x17f8   :  { %v2707_v14 = vpop.f32.mrb[80].mxu0 }
0x17f9   :  { %v2708_v19 = vadd.f32 %v3089_v33, %v2707_v14  ;;  %v3491_v20 = vpop.f32.mrb[81].mxu0 }
0x17fa   :  { %v2710_v11 = vpop.f32.mrb[82].mxu0 }
0x17fb   :  { %v2711_v21 = vadd.f32 %v3089_v33, %v2710_v11  ;;  %v3492_v30 = vpop.f32.mrb[83].mxu0  ;;  %v2714_v22 = vadd.f32 %v2708_v19, %v2538_v45 }
0x17fd   :  { %v2720_v4 = vsel %vm83_vm0, %v2714_v22, 0.0  ;;  %v2715_v23 = vadd.f32 %v2711_v21, %v2539_v12 }
0x17fe   :  { %2721 = vadd.xlane.f32.xlu1 %v2720_v4 }
0x17ff   :  { %v2723_v24 = vsel %vm83_vm0, %v2715_v23, 0.0 }
0x1800   :  { %2724 = vadd.xlane.f32.xlu0 %v2723_v24 }
0x188b   :  { %v2722_v25 = vpop.xlane.xlu1 %2721 }
0x188c   :  { %v2726_v59 = vmul.f32 0.03125, %v2722_v25 }
0x188d   :  { %v2725_v26 = vpop.xlane.xlu0 %2724 }
0x188e   :  { %v2728_v58 = vsub.f32 %v2714_v22, %v2726_v59  ;;  %v2727_v27 = vmul.f32 0.03125, %v2725_v26 }
0x1890   :  { %v2729_v17 = vsub.f32 %v2715_v23, %v2727_v27  ;;  %v2730_v5 = vmul.f32 %v2728_v58, %v2728_v58 }
0x1892   :  { %v2732_v28 = vsel %vm83_vm0, %v2730_v5, 0.0  ;;  %v2731_v29 = vmul.f32 %v2729_v17, %v2729_v17 }
0x1893   :  { %2733 = vadd.xlane.f32.xlu1 %v2732_v28 }
0x1894   :  { %v2735_v31 = vsel %vm83_vm0, %v2731_v29, 0.0 }
0x1895   :  { %2736 = vadd.xlane.f32.xlu0 %v2735_v31 }
0x1920   :  { %v2734_v37 = vpop.xlane.xlu1 %2733 }
0x1921   :  { %v2738_v38 = vmul.f32 0.03125, %v2734_v37 }
0x1922   :  { %v2737_v39 = vpop.xlane.xlu0 %2736 }
0x1923   :  { %v2740_v42 = vadd.f32 1e-12, %v2738_v38  ;;  %v2739_v43 = vmul.f32 0.03125, %v2737_v39 }
0x1925   :  { %3612 = vrsqrt.f32 %v2740_v42  ;;  %v2741_v35 = vadd.f32 1e-12, %v2739_v43 }
0x1927   :  { %3614 = vrsqrt.f32 %v2741_v35 }
0x192f   :  { %v3613_v44 = vpop.eup %3612 }
0x1930   :  { %v2744_v45 = vmul.f32 %v3613_v44, %v2728_v58 }
0x1931   :  { %v3615_v12 = vpop.eup %3614 }
0x1932   :  { %v2745_v47 = vmul.f32 %v3615_v12, %v2729_v17  ;;  %v2752_v48 = vmul.f32 %v3097_v46, %v2744_v45 }
0x1934   :  { %v2753_v49 = vmul.f32 %v3097_v46, %v2745_v47  ;;  %v2760_v52 = vadd.f32 %v3098_v50, %v2752_v48 }
0x1936   :  { %v2761_v51 = vadd.f32 %v3098_v50, %v2753_v49 }
0x1938   :  { %v2763_v53 = vrot.slane %v2761_v51, 7 }
0x193a   :  { %v2766_v54 = vsel %vm2765_vm6, %v2760_v52, %v2763_v53 }
0x193b   :  { %v2767_v15 = vpack.c.bf16 %v2766_v54, %v2766_v54 }
0x193d   :  { %3498 = vmatmul.mubr.msk.bf16.vlgmr.msra.gmra.mrb[76].mxu1 %vm83_vm0, %v2767_v15 }
0x193e   :  { %3505 = vmatprep.mubr.msk.bf16.mxu1 %vm3643_vm1, %v3642_v16  ;;  %3502 = vmatpush3.bf16.msra.mxu1 %v3554_v55 }
0x193f   :  { %3503 = vmatprep.subr.bf16.mxu1 %v3642_v16  ;;  %v3103_v16 = vld [vmem:[%s4375_s23] ss:$0 sm:$0xff] }
0x1942   :  { %3504 = vmatpush3.bf16.msra.mxu1 %v3555_v60 }
0x1a10   :  { %v2828_v62 = vpop.f32.mrb[76].mxu1 }
0x1a11   :  { %v2829_v63 = vadd.f32 %v3099_v61, %v2828_v62  ;;  %v3499_v0 = vpop.f32.mrb[77].mxu1 }
0x1a12   :  { %v2831_v1 = vpop.f32.mrb[78].mxu1 }
0x1a13   :  { %3616 = vtanh.f32 %v2829_v63  ;;  %v3500_v2 = vpop.f32.mrb[79].mxu1 }
0x1a1d   :  { %v3617_v18 = vpop.eup %3616 }
0x1a1e   :  { %v2835_v41 = vpack.c.bf16 %v3617_v18, %v3617_v18 }
0x1a20   :  { %3506 = vmatmul.mubr.msk.bf16.vlgmr.msra.gmra.mrb[80].mxu1 %vm83_vm0, %v2835_v41 }
0x1af3   :  { %v2896_v3 = vpop.f32.mrb[80].mxu1 }
0x1af4   :  { %v2897_v6 = vadd.f32 %v3103_v16, %v2896_v3  ;;  %v3507_v7 = vpop.f32.mrb[81].mxu1 }
0x1af5   :  { %v2899_v8 = vpop.f32.mrb[82].mxu1 }
0x1af6   :  { %v3508_v9 = vpop.f32.mrb[83].mxu1  ;;  %2903 = vst.msk [vmem:[#allocation2] sm:$0x3] %vm2902_vm7, %v2897_v6 }
0x1af7   :  { %3629 = shalt.err (!%p3626_p4)
}
0x1af8   :  { %s3630_s23 = scalar_lea.hbm %s4376_s24, 32 }
0x1af9   :  { %p3631_p5 = scmp.ne.s32.totalorder %s4376_s24, %s3630_s23  ;;  %p3634_p6 = scmp.lt.u32.totalorder %s3630_s23, %s4376_s24 }
0x1afb   :  { %p3636_p7 = pnand %p3634_p6, %p3631_p5 }
0x1afd   :  { %3639 = shalt.err (!%p3636_p7)
}
0x1afe   :  { %2913 = dma.vmem_to_hbm [thread:$0]  %s2911_s28, 32, %s4376_s24, [#allocation3]  }
0x1aff   :  { %3640 = dma.done.wait [#allocation3], 32  }
0x1b00   :  { %3641 = vsyncadd [#allocation3], 4294967264 }
0x1b01   :  { %2917 = vsyncpa [#allocation3], 1 }

</bundles_post_ra>
